<compile_context>
chip_gen: v5e
topology: v5e:2x2
jax: 0.10.0
libtpu: 0.0.40
codegen_flags: <defaults>
</compile_context>

<pallas_src>
import functools

import jax
import jax.numpy as jnp
import numpy as np
from jax import lax
from jax.experimental import pallas as pl
from jax.experimental.pallas import tpu as pltpu

NUM_CLASSES = 2
NUM_ANCHORS = 100
K_PAD = 128                       # anchors padded to a full lane width
PRECISION_RANGE = (0.0, 1.0)


def _round_up(n, m):
    return ((n + m - 1) // m) * m


def _auprc_partials_kernel(logits_ref, targets_ref, bias_hi_ref, bias_lo_ref,
                           pos_w_ref, neg_w_ref, out_ref, *, n_total, tile_n):
    """Emit per-tile partial sums into out_ref (shape (4, K_PAD)):

       row 0 : sum_n hinge[n, class=0, :]   (per anchor, weights folded in)
       row 1 : sum_n hinge[n, class=1, :]   (per anchor)
       row 2 : number of class-1 rows in this tile (broadcast across lanes)
       row 3 : number of valid rows in this tile   (broadcast across lanes)
    """
    logit1 = logits_ref[...]                                    # (tile_n, 1)
    tgt = targets_ref[...]                                      # (tile_n, 1) int32

    # Row-validity mask for the (possibly partial) last tile.
    base = pl.program_id(0) * tile_n
    row_ids = lax.broadcasted_iota(jnp.int32, (tile_n, 1), 0)
    valid = (base + row_ids) < n_total                          # (tile_n, 1) bool

    for c in range(NUM_CLASSES):                                # C == 2, unrolled
        logit_c = logit1 if c == 1 else (1.0 - logit1)          # (tile_n, 1)
        is_pos = tgt == c                                       # one-hot label, (tile_n, 1)

        # 1 - (logit - b) == (1 + b) - logit ; 1 + (logit - b) == (1 - b) + logit
        pos_arg = bias_hi_ref[c:c + 1, :] - logit_c             # (tile_n, K_PAD)
        neg_arg = bias_lo_ref[c:c + 1, :] + logit_c             # (tile_n, K_PAD)
        pos_branch = jnp.maximum(pos_arg, 0.0) * pos_w_ref[c:c + 1, :]
        neg_branch = jnp.maximum(neg_arg, 0.0) * neg_w_ref[c:c + 1, :]

        hinge = jnp.where(is_pos, pos_branch, neg_branch)       # label select
        hinge = jnp.where(valid, hinge, 0.0)                    # mask rows past N

        out_ref[c:c + 1, :] = jnp.sum(hinge, axis=0, keepdims=True)

        if c == 1:
            cnt1 = jnp.sum(jnp.where(is_pos & valid, 1.0, 0.0),
                           axis=0, keepdims=True)               # (1, 1)
            out_ref[2:3, :] = jnp.broadcast_to(cnt1, (1, K_PAD))

    n_valid = jnp.sum(valid.astype(jnp.float32), axis=0, keepdims=True)   # (1, 1)
    out_ref[3:4, :] = jnp.broadcast_to(n_valid, (1, K_PAD))


def auprc_hinge_loss(logits, targets, biases, lambdas, *, tile_n=1024):
    """logits: (N, 1) float32 scores, targets: (N,) int32 in {0, 1}."""
    N = logits.shape[0]
    C, K = NUM_CLASSES, NUM_ANCHORS
    tile_n = _round_up(min(tile_n, _round_up(N, 8)), 8)
    num_tiles = pl.cdiv(N, tile_n)

    prec = jnp.linspace(PRECISION_RANGE[0], PRECISION_RANGE[1],
                        K + 1)[1:].astype(jnp.float32)          # (K,)
    delta = (PRECISION_RANGE[1] - PRECISION_RANGE[0]) / K

    lam = jnp.maximum(lambdas.astype(jnp.float32), 0.0)         # LagrangeMultiplier fwd
    pos_w = (1.0 + lam) * (1.0 - prec)                          # (C, K)
    neg_w = lam * prec                                          # (C, K)

    # Pad anchors to 128 lanes; pad anchor-weights are 0 -> pad lanes sum to 0.
    pad = ((0, 0), (0, K_PAD - K))
    pos_w_p = jnp.pad(pos_w, pad)
    neg_w_p = jnp.pad(neg_w, pad)
    bias_hi = jnp.pad(1.0 + biases.astype(jnp.float32), pad)
    bias_lo = jnp.pad(1.0 - biases.astype(jnp.float32), pad)

    logits_f = logits.reshape(N, 1).astype(jnp.float32)
    targets_i = targets.reshape(N, 1).astype(jnp.int32)

    kernel = functools.partial(_auprc_partials_kernel, n_total=N, tile_n=tile_n)
    cost = pl.CostEstimate(
        flops=int(10 * C * num_tiles * tile_n * K_PAD),
        transcendentals=0,
        bytes_accessed=int(8 * N + 4 * num_tiles * 4 * K_PAD + 4 * 4 * C * K_PAD),
    )

    partials = pl.pallas_call(
        kernel,
        out_shape=jax.ShapeDtypeStruct((num_tiles, 4, K_PAD), jnp.float32),
        grid=(num_tiles,),
        in_specs=[
            pl.BlockSpec((tile_n, 1), lambda i: (i, 0)),        # logits slice
            pl.BlockSpec((tile_n, 1), lambda i: (i, 0)),        # targets slice
            pl.BlockSpec((C, K_PAD), lambda i: (0, 0)),         # 1 + biases
            pl.BlockSpec((C, K_PAD), lambda i: (0, 0)),         # 1 - biases
            pl.BlockSpec((C, K_PAD), lambda i: (0, 0)),         # positive anchor weights
            pl.BlockSpec((C, K_PAD), lambda i: (0, 0)),         # negative anchor weights
        ],
        out_specs=pl.BlockSpec((None, 4, K_PAD), lambda i: (i, 0, 0)),
        compiler_params=pltpu.CompilerParams(
            dimension_semantics=("parallel",)),                 # each tile owns its slot
        cost_estimate=cost,
    )(logits_f, targets_i, bias_hi, bias_lo, pos_w_p, neg_w_p)

    # ---- tiny plain-JAX finalize: global priors, lambda term, normalization ----
    hinge_total = jnp.sum(partials[:, 0:2, :])                  # pad lanes are exactly 0
    cnt1 = jnp.sum(partials[:, 2, 0])                           # global class-1 count
    w_sum = jnp.sum(partials[:, 3, 0])                          # global sum of weights (=N)
    cnt0 = w_sum - cnt1
    priors = (jnp.stack([cnt0, cnt1]) + 1.0) / (w_sum + 2.0)    # (C,)
    # sum_{n,c,k} lambda_term == N * sum_c prior_c * sum_k lam[c,k]*(1-prec[k])
    lam_correction = N * jnp.sum(priors * jnp.sum(lam * (1.0 - prec), axis=1))
    total = hinge_total - lam_correction
    loss = total * delta / (PRECISION_RANGE[1] - PRECISION_RANGE[0]) / (N * C)
    return loss


def _reference_loss(logits, targets, biases, lambdas_raw):
    """Pure-JAX reference mirroring the PyTorch forward, for validation."""
    logits2 = jnp.concatenate([1.0 - logits, logits], axis=1)           # (N, 2)
    N, C = logits2.shape
    labels = jax.nn.one_hot(targets, C, dtype=jnp.float32)              # (N, 2)
    weights = jnp.ones((N, 1), jnp.float32)
    prec = jnp.linspace(PRECISION_RANGE[0], PRECISION_RANGE[1],
                        NUM_ANCHORS + 1)[1:].astype(jnp.float32)        # (K,)
    delta = (PRECISION_RANGE[1] - PRECISION_RANGE[0]) / NUM_ANCHORS

    lam = jnp.maximum(lambdas_raw, 0.0)                                 # (C, K)
    pos_w = (1.0 + lam) * (1.0 - prec)
    neg_w = lam * prec
    shifted = logits2[:, :, None] - biases[None, :, :]                  # (N, C, K)
    pos_term = jnp.maximum(1.0 - shifted, 0.0) * labels[:, :, None]
    neg_term = jnp.maximum(1.0 + shifted, 0.0) * (1.0 - labels[:, :, None])
    hinge = pos_term * pos_w[None] + neg_term * neg_w[None]             # (N, C, K)

    class_priors = ((weights * labels).sum(0) + 1.0) / (weights.sum(0) + 2.0)  # (C,)
    lambda_term = class_priors[:, None] * (lam * (1.0 - prec))          # (C, K)
    per_anchor = weights[:, :, None] * hinge - lambda_term[None]        # (N, C, K)
    loss = per_anchor.sum(2) * delta                                    # (N, C)
    loss = loss / (PRECISION_RANGE[1] - PRECISION_RANGE[0])
    return loss.mean()


if __name__ == "__main__":
    key = jax.random.PRNGKey(0)
    k1, k2, k3, k4 = jax.random.split(key, 4)

    # Small but multi-tile batch; deliberately NOT a multiple of the tile size
    # so the partial-tile row mask is exercised.
    N = 333
    logits = jax.random.uniform(k1, (N, 1), dtype=jnp.float32)          # scores in [0, 1)
    targets = jax.random.randint(k2, (N,), 0, NUM_CLASSES, dtype=jnp.int32)

    # The module initializes biases=0, lambdas=1; perturb them so the bias shift
    # and the Lagrange clamp(min=0) paths are actually exercised.
    biases = 0.1 * jax.random.normal(k3, (NUM_CLASSES, NUM_ANCHORS), dtype=jnp.float32)
    lambdas = jax.random.normal(k4, (NUM_CLASSES, NUM_ANCHORS), dtype=jnp.float32)

    loss = auprc_hinge_loss(logits, targets, biases, lambdas, tile_n=128)
    loss = jax.block_until_ready(loss)

    ref = jax.block_until_ready(_reference_loss(logits, targets, biases, lambdas))
    np.testing.assert_allclose(np.asarray(loss), np.asarray(ref), rtol=1e-4, atol=1e-5)

    print("KERNEL_OK")
</pallas_src>

<mosaic_0001>
module attributes {stable_mosaic.version = 11 : i64} {
  func.func @_auprc_partials_kernel(%arg0: i32, %arg1: memref<128x1xf32, #tpu.memory_space<vmem>>, %arg2: memref<128x1xi32, #tpu.memory_space<vmem>>, %arg3: memref<2x128xf32, #tpu.memory_space<vmem>>, %arg4: memref<2x128xf32, #tpu.memory_space<vmem>>, %arg5: memref<2x128xf32, #tpu.memory_space<vmem>>, %arg6: memref<2x128xf32, #tpu.memory_space<vmem>>, %arg7: memref<1x4x128xf32, #tpu.memory_space<vmem>>) attributes {dimension_semantics = [#tpu.dimension_semantics<parallel>], iteration_bounds = array<i64: 3>, scalar_prefetch = 0 : i64, scratch_operands = 0 : i64, tpu.core_type = #tpu.core_type<tc>, window_params = [{transform_indices = @transform_0, window_bounds = array<i64: 128, 1>}, {transform_indices = @transform_1, window_bounds = array<i64: 128, 1>}, {pipeline_mode = #tpu.pipeline_mode<synchronous>, transform_indices = @transform_2, window_bounds = array<i64: 2, 128>}, {pipeline_mode = #tpu.pipeline_mode<synchronous>, transform_indices = @transform_3, window_bounds = array<i64: 2, 128>}, {pipeline_mode = #tpu.pipeline_mode<synchronous>, transform_indices = @transform_4, window_bounds = array<i64: 2, 128>}, {pipeline_mode = #tpu.pipeline_mode<synchronous>, transform_indices = @transform_5, window_bounds = array<i64: 2, 128>}, {transform_indices = @transform_6, window_bounds = array<i64: 1, 4, 128>}]} {
    %c0 = arith.constant 0 : index
    %c0_0 = arith.constant 0 : index
    %0 = vector.load %arg1[%c0, %c0_0] : memref<128x1xf32, #tpu.memory_space<vmem>>, vector<128x1xf32>
    %c0_1 = arith.constant 0 : index
    %c0_2 = arith.constant 0 : index
    %1 = vector.load %arg2[%c0_1, %c0_2] : memref<128x1xi32, #tpu.memory_space<vmem>>, vector<128x1xi32>
    %c128_i32 = arith.constant 128 : i32
    %2 = arith.muli %arg0, %c128_i32 : i32
    %3 = tpu.iota {dimensions = array<i32: 0>} : vector<128x1xi32>
    %4 = vector.broadcast %2 : i32 to vector<128x1xi32>
    %5 = arith.addi %4, %3 : vector<128x1xi32>
    %c333_i32 = arith.constant 333 : i32
    %6 = vector.broadcast %c333_i32 : i32 to vector<128x1xi32>
    %7 = arith.cmpi slt, %5, %6 : vector<128x1xi32>
    %cst = arith.constant 1.000000e+00 : f32
    %8 = vector.broadcast %cst : f32 to vector<128x1xf32>
    %9 = arith.subf %8, %0 : vector<128x1xf32>
    %c0_i32 = arith.constant 0 : i32
    %10 = vector.broadcast %c0_i32 : i32 to vector<128x1xi32>
    %11 = arith.cmpi eq, %1, %10 : vector<128x1xi32>
    %c0_3 = arith.constant 0 : index
    %c0_4 = arith.constant 0 : index
    %12 = vector.load %arg3[%c0_3, %c0_4] : memref<2x128xf32, #tpu.memory_space<vmem>>, vector<1x128xf32>
    %13 = vector.broadcast %12 : vector<1x128xf32> to vector<128x128xf32>
    %14 = vector.broadcast %9 : vector<128x1xf32> to vector<128x128xf32>
    %15 = arith.subf %13, %14 : vector<128x128xf32>
    %c0_5 = arith.constant 0 : index
    %c0_6 = arith.constant 0 : index
    %16 = vector.load %arg4[%c0_5, %c0_6] : memref<2x128xf32, #tpu.memory_space<vmem>>, vector<1x128xf32>
    %17 = vector.broadcast %16 : vector<1x128xf32> to vector<128x128xf32>
    %18 = vector.broadcast %9 : vector<128x1xf32> to vector<128x128xf32>
    %19 = arith.addf %17, %18 : vector<128x128xf32>
    %cst_7 = arith.constant 0.000000e+00 : f32
    %20 = vector.broadcast %cst_7 : f32 to vector<128x128xf32>
    %21 = arith.maximumf %15, %20 : vector<128x128xf32>
    %c0_8 = arith.constant 0 : index
    %c0_9 = arith.constant 0 : index
    %22 = vector.load %arg5[%c0_8, %c0_9] : memref<2x128xf32, #tpu.memory_space<vmem>>, vector<1x128xf32>
    %23 = vector.broadcast %22 : vector<1x128xf32> to vector<128x128xf32>
    %24 = arith.mulf %21, %23 : vector<128x128xf32>
    %cst_10 = arith.constant 0.000000e+00 : f32
    %25 = vector.broadcast %cst_10 : f32 to vector<128x128xf32>
    %26 = arith.maximumf %19, %25 : vector<128x128xf32>
    %c0_11 = arith.constant 0 : index
    %c0_12 = arith.constant 0 : index
    %27 = vector.load %arg6[%c0_11, %c0_12] : memref<2x128xf32, #tpu.memory_space<vmem>>, vector<1x128xf32>
    %28 = vector.broadcast %27 : vector<1x128xf32> to vector<128x128xf32>
    %29 = arith.mulf %26, %28 : vector<128x128xf32>
    %30 = vector.shape_cast %11 : vector<128x1xi1> to vector<128x1xi1>
    %31 = vector.broadcast %30 : vector<128x1xi1> to vector<128x128xi1>
    %32 = arith.select %31, %24, %29 : vector<128x128xi1>, vector<128x128xf32>
    %cst_13 = arith.constant 0.000000e+00 : f32
    %33 = vector.shape_cast %7 : vector<128x1xi1> to vector<128x1xi1>
    %34 = vector.broadcast %33 : vector<128x1xi1> to vector<128x128xi1>
    %35 = vector.broadcast %cst_13 : f32 to vector<128x128xf32>
    %36 = arith.select %34, %32, %35 : vector<128x128xi1>, vector<128x128xf32>
    %cst_14 = arith.constant dense<0.000000e+00> : vector<128xf32>
    %37 = vector.multi_reduction <add>, %36, %cst_14 [0] : vector<128x128xf32> to vector<128xf32>
    %38 = vector.shape_cast %37 : vector<128xf32> to vector<1x128xf32>
    %c0_15 = arith.constant 0 : index
    %c0_16 = arith.constant 0 : index
    %c0_17 = arith.constant 0 : index
    %39 = vector.load %arg7[%c0_15, %c0_16, %c0_17] : memref<1x4x128xf32, #tpu.memory_space<vmem>>, vector<1x1x128xf32>
    %40 = vector.shape_cast %39 : vector<1x1x128xf32> to vector<1x128xf32>
    %41 = vector.shape_cast %38 : vector<1x128xf32> to vector<1x1x128xf32>
    tpu.vector_store %arg7[%c0_15, %c0_16, %c0_17], %41 {strides = array<i32>} : memref<1x4x128xf32, #tpu.memory_space<vmem>>, vector<1x1x128xf32>,
    %c1_i32 = arith.constant 1 : i32
    %42 = vector.broadcast %c1_i32 : i32 to vector<128x1xi32>
    %43 = arith.cmpi eq, %1, %42 : vector<128x1xi32>
    %c1 = arith.constant 1 : index
    %c0_18 = arith.constant 0 : index
    %44 = vector.load %arg3[%c1, %c0_18] : memref<2x128xf32, #tpu.memory_space<vmem>>, vector<1x128xf32>
    %45 = vector.broadcast %44 : vector<1x128xf32> to vector<128x128xf32>
    %46 = vector.broadcast %0 : vector<128x1xf32> to vector<128x128xf32>
    %47 = arith.subf %45, %46 : vector<128x128xf32>
    %c1_19 = arith.constant 1 : index
    %c0_20 = arith.constant 0 : index
    %48 = vector.load %arg4[%c1_19, %c0_20] : memref<2x128xf32, #tpu.memory_space<vmem>>, vector<1x128xf32>
    %49 = vector.broadcast %48 : vector<1x128xf32> to vector<128x128xf32>
    %50 = vector.broadcast %0 : vector<128x1xf32> to vector<128x128xf32>
    %51 = arith.addf %49, %50 : vector<128x128xf32>
    %cst_21 = arith.constant 0.000000e+00 : f32
    %52 = vector.broadcast %cst_21 : f32 to vector<128x128xf32>
    %53 = arith.maximumf %47, %52 : vector<128x128xf32>
    %c1_22 = arith.constant 1 : index
    %c0_23 = arith.constant 0 : index
    %54 = vector.load %arg5[%c1_22, %c0_23] : memref<2x128xf32, #tpu.memory_space<vmem>>, vector<1x128xf32>
    %55 = vector.broadcast %54 : vector<1x128xf32> to vector<128x128xf32>
    %56 = arith.mulf %53, %55 : vector<128x128xf32>
    %cst_24 = arith.constant 0.000000e+00 : f32
    %57 = vector.broadcast %cst_24 : f32 to vector<128x128xf32>
    %58 = arith.maximumf %51, %57 : vector<128x128xf32>
    %c1_25 = arith.constant 1 : index
    %c0_26 = arith.constant 0 : index
    %59 = vector.load %arg6[%c1_25, %c0_26] : memref<2x128xf32, #tpu.memory_space<vmem>>, vector<1x128xf32>
    %60 = vector.broadcast %59 : vector<1x128xf32> to vector<128x128xf32>
    %61 = arith.mulf %58, %60 : vector<128x128xf32>
    %62 = vector.shape_cast %43 : vector<128x1xi1> to vector<128x1xi1>
    %63 = vector.broadcast %62 : vector<128x1xi1> to vector<128x128xi1>
    %64 = arith.select %63, %56, %61 : vector<128x128xi1>, vector<128x128xf32>
    %cst_27 = arith.constant 0.000000e+00 : f32
    %65 = vector.shape_cast %7 : vector<128x1xi1> to vector<128x1xi1>
    %66 = vector.broadcast %65 : vector<128x1xi1> to vector<128x128xi1>
    %67 = vector.broadcast %cst_27 : f32 to vector<128x128xf32>
    %68 = arith.select %66, %64, %67 : vector<128x128xi1>, vector<128x128xf32>
    %cst_28 = arith.constant dense<0.000000e+00> : vector<128xf32>
    %69 = vector.multi_reduction <add>, %68, %cst_28 [0] : vector<128x128xf32> to vector<128xf32>
    %70 = vector.shape_cast %69 : vector<128xf32> to vector<1x128xf32>
    %c0_29 = arith.constant 0 : index
    %c1_30 = arith.constant 1 : index
    %c0_31 = arith.constant 0 : index
    %71 = vector.load %arg7[%c0_29, %c1_30, %c0_31] : memref<1x4x128xf32, #tpu.memory_space<vmem>>, vector<1x1x128xf32>
    %72 = vector.shape_cast %71 : vector<1x1x128xf32> to vector<1x128xf32>
    %73 = vector.shape_cast %70 : vector<1x128xf32> to vector<1x1x128xf32>
    tpu.vector_store %arg7[%c0_29, %c1_30, %c0_31], %73 {strides = array<i32>} : memref<1x4x128xf32, #tpu.memory_space<vmem>>, vector<1x1x128xf32>,
    %74 = arith.andi %43, %7 : vector<128x1xi1>
    %cst_32 = arith.constant 1.000000e+00 : f32
    %cst_33 = arith.constant 0.000000e+00 : f32
    %75 = vector.broadcast %cst_32 : f32 to vector<128x1xf32>
    %76 = vector.broadcast %cst_33 : f32 to vector<128x1xf32>
    %77 = arith.select %74, %75, %76 : vector<128x1xi1>, vector<128x1xf32>
    %cst_34 = arith.constant dense<0.000000e+00> : vector<1xf32>
    %78 = vector.multi_reduction <add>, %77, %cst_34 [0] : vector<128x1xf32> to vector<1xf32>
    %79 = vector.shape_cast %78 : vector<1xf32> to vector<1x1xf32>
    %80 = vector.shape_cast %79 : vector<1x1xf32> to vector<1x1xf32>
    %81 = vector.broadcast %80 : vector<1x1xf32> to vector<1x128xf32>
    %c0_35 = arith.constant 0 : index
    %c2 = arith.constant 2 : index
    %c0_36 = arith.constant 0 : index
    %82 = vector.load %arg7[%c0_35, %c2, %c0_36] : memref<1x4x128xf32, #tpu.memory_space<vmem>>, vector<1x1x128xf32>
    %83 = vector.shape_cast %82 : vector<1x1x128xf32> to vector<1x128xf32>
    %84 = vector.shape_cast %81 : vector<1x128xf32> to vector<1x1x128xf32>
    tpu.vector_store %arg7[%c0_35, %c2, %c0_36], %84 {strides = array<i32>} : memref<1x4x128xf32, #tpu.memory_space<vmem>>, vector<1x1x128xf32>,
    %85 = arith.extui %7 : vector<128x1xi1> to vector<128x1xi32>
    %86 = arith.sitofp %85 : vector<128x1xi32> to vector<128x1xf32>
    %cst_37 = arith.constant dense<0.000000e+00> : vector<1xf32>
    %87 = vector.multi_reduction <add>, %86, %cst_37 [0] : vector<128x1xf32> to vector<1xf32>
    %88 = vector.shape_cast %87 : vector<1xf32> to vector<1x1xf32>
    %89 = vector.shape_cast %88 : vector<1x1xf32> to vector<1x1xf32>
    %90 = vector.broadcast %89 : vector<1x1xf32> to vector<1x128xf32>
    %c0_38 = arith.constant 0 : index
    %c3 = arith.constant 3 : index
    %c0_39 = arith.constant 0 : index
    %91 = vector.load %arg7[%c0_38, %c3, %c0_39] : memref<1x4x128xf32, #tpu.memory_space<vmem>>, vector<1x1x128xf32>
    %92 = vector.shape_cast %91 : vector<1x1x128xf32> to vector<1x128xf32>
    %93 = vector.shape_cast %90 : vector<1x128xf32> to vector<1x1x128xf32>
    tpu.vector_store %arg7[%c0_38, %c3, %c0_39], %93 {strides = array<i32>} : memref<1x4x128xf32, #tpu.memory_space<vmem>>, vector<1x1x128xf32>,
    return
  }
  func.func @transform_0(%arg0: i32) -> (i32, i32) {
    %c0_i32 = arith.constant 0 : i32
    %c0_i32_0 = arith.constant 0 : i32
    return %arg0, %c0_i32 : i32, i32
  }
  func.func @transform_1(%arg0: i32) -> (i32, i32) {
    %c0_i32 = arith.constant 0 : i32
    %c0_i32_0 = arith.constant 0 : i32
    return %arg0, %c0_i32 : i32, i32
  }
  func.func @transform_2(%arg0: i32) -> (i32, i32) {
    %c0_i32 = arith.constant 0 : i32
    %c0_i32_0 = arith.constant 0 : i32
    %c0_i32_1 = arith.constant 0 : i32
    return %c0_i32, %c0_i32_0 : i32, i32
  }
  func.func @transform_3(%arg0: i32) -> (i32, i32) {
    %c0_i32 = arith.constant 0 : i32
    %c0_i32_0 = arith.constant 0 : i32
    %c0_i32_1 = arith.constant 0 : i32
    return %c0_i32, %c0_i32_0 : i32, i32
  }
  func.func @transform_4(%arg0: i32) -> (i32, i32) {
    %c0_i32 = arith.constant 0 : i32
    %c0_i32_0 = arith.constant 0 : i32
    %c0_i32_1 = arith.constant 0 : i32
    return %c0_i32, %c0_i32_0 : i32, i32
  }
  func.func @transform_5(%arg0: i32) -> (i32, i32) {
    %c0_i32 = arith.constant 0 : i32
    %c0_i32_0 = arith.constant 0 : i32
    %c0_i32_1 = arith.constant 0 : i32
    return %c0_i32, %c0_i32_0 : i32, i32
  }
  func.func @transform_6(%arg0: i32) -> (i32, i32, i32) {
    %c0_i32 = arith.constant 0 : i32
    %c0_i32_0 = arith.constant 0 : i32
    %c0_i32_1 = arith.constant 0 : i32
    return %arg0, %c0_i32, %c0_i32_0 : i32, i32, i32
  }
}

</mosaic_0001>

<bundles_post_ra>
// kernel: tpu_custom_call.1
= control target key start
LH: loop header
LB: loop body
LE: loop exit
PB: predicated region body
PF: predicated region fallthrough
CT: control target
= control target key end

     0   :  { %11 = vsyncpa [#allocation3], 0  ;;  %s2445_s0 = inlined_call_operand.vmem [shape: f32[333,1], index: 0, kind: input, shape index: {}]   ;;  %s2446_s1 = inlined_call_operand.vmem [shape: s32[333,1], index: 1, kind: input, shape index: {}]   ;;  %s2447_s2 = inlined_call_operand.vmem [shape: f32[2,128], index: 2, kind: input, shape index: {}]   ;;  %s2448_s3 = inlined_call_operand.vmem [shape: f32[2,128], index: 3, kind: input, shape index: {}]   ;;  %s2449_s4 = inlined_call_operand.vmem [shape: f32[2,128], index: 4, kind: input, shape index: {}]   ;;  %s2450_s5 = inlined_call_operand.vmem [shape: f32[2,128], index: 5, kind: input, shape index: {}]   ;;  %s2451_s6 = inlined_call_operand.hbm [shape: f32[3,4,128], index: 6, kind: output, shape index: {}]  }
   0x1   :  { %13 = vsyncpa [#allocation3 + $0x1], 0  ;;  %s1497_s21 = smov 0   ;;  %s1499_s22 = smov 0  }
   0x2   :  { %s1501_s23 = smov 0   ;;  %s1503_s24 = smov 0  }
   0x3 LB: > { %s1518_s25 = sadd.s32 4294967295, %s1458_s24   ;;  %s1314_s26 = sadd.s32 4294967294, %s1458_s24   ;;  %s1458_s24 = sphi %s1503_s24, %s2507_s24   ;;  %s1454_s23 = sphi %s1501_s23, %s2506_s23   ;;  %s1450_s22 = sphi %s1499_s22, %s2505_s22   ;;  %s1446_s21 = sphi %s1497_s21, %s2504_s21  }
   0x4   : > { %s1522_s27 = sadd.s32 1, %s1458_s24   ;;  %s162_s28 = sadd.s32 1, %s1454_s23 }
   0x5   : > { %s159_s29 = ssub.s32 %s1458_s24, %s1522_s27  ;;  %p172_p0 = scmp.ne.s32.totalorder %s1454_s23, %s1450_s22 }
   0x6   : > { %p160_p1 = scmp.eq.s32.totalorder %s159_s29, 0  ;;  %p173_p2 = scmp.eq.s32.totalorder %s1518_s25, 2 }
   0x7   : > { %p178_p3 = scmp.ne.s32.totalorder %s1450_s22, %s1446_s21  ;;  %p179_p4 = scmp.eq.s32.totalorder %s1314_s26, 2 }
   0x8   : > { %s1533_s30 = scalar_select %p160_p1, %s1454_s23, %s162_s28  }
   0x9   : > { %p1535_p5 = por %p173_p2, %p172_p0  ;;  %p1539_p6 = por %p179_p4, %p178_p3 }
   0xa   : > { %p1317_p7 = scmp.ge.s32.totalorder %s1458_s24, 1  ;;  %p243_p8 = scmp.lt.s32.totalorder %s1458_s24, 4 }
   0xc   : > { %p244_p9 = pnand %p1317_p7, %p243_p8 }
   0xd   : > { %s1319_s9 = sshll.u32 (!%p244_p9), %s1518_s25, 4  ;;  %s1323_s17 = sshll.u32 (!%p244_p9), %s1518_s25, 7 }
   0xe   : > { %247 = sbr.rel (%p244_p9) target bundleno = 329 (0x149), region = 44  ;;  %p291_p10 = scmp.lt.s32.totalorder (!%p244_p9), %s1319_s9, 41 }
   0xf   : > { %s283_s11 = sand.u32 (!%p244_p9), 1, %s1450_s22   ;;  %s1341_s28 = sshll.u32 (!%p244_p9), %s1518_s25, 2 }
  0x10   : > { %s1318_s12 = sshll.u32 (!%p244_p9), %s283_s11, 2  ;;  %s1228_s15 = scalar_lea.sflag (!%p244_p9), [#allocation3], %s283_s11 }
  0x11   : > { %s1416_s19 = scalar_lea.hbm (!%p244_p9), %s2451_s6, 12 }
  0x13   : > { %v1460_v0 = vmov 0   ;;  %s2509_s9 = smov (!%p291_p10, %s1319_s9), 41 }
  0x14   : > { %1387 = vset.pattern.permute.xlu2 %v1460_v0  ;;  %1386 = vset.pattern.permute.xlu1 %v1460_v0  ;;  %s1320_s10 = sshll.u32 %s2509_s9, 3 }
  0x15   : > { %1385 = vset.pattern.permute.xlu0 %v1460_v0  ;;  %s1557_s13 = scalar_lea.vmem %s2445_s0, %s1320_s10  ;;  %s1623_s16 = scalar_lea.vmem %s2446_s1, %s1320_s10 }
  0x16   : > { %v1560_v1 = vld [vmem:[%s1557_s13 + $0x20] sm:$0xff]  ;;  %v1563_v2 = vld [vmem:[%s1557_s13 + $0x10] sm:$0xff]  ;;  %v1572_v7 = vld [vmem:[%s1557_s13 + $0x28] sm:$0xff]  ;;  %s1238_s10 = scalar_lea.hbm %s2451_s6, %s1341_s28 }
  0x17   : > { %v1566_v3 = vld [vmem:[%s1557_s13] sm:$0xff]  ;;  %v401_v4 = vsub.f32 1.0, %v1560_v1  ;;  %v399_v5 = vsub.f32 1.0, %v1563_v2  ;;  %v1575_v8 = vld [vmem:[%s1557_s13 + $0x18] sm:$0xff]  ;;  %v1578_v9 = vld [vmem:[%s1557_s13 + $0x8] sm:$0xff]  ;;  %v402_v10 = vsub.f32 1.0, %v1572_v7 }
  0x18   : > { %v397_v6 = vsub.f32 1.0, %v1566_v3  ;;  %v400_v11 = vsub.f32 1.0, %v1575_v8  ;;  %v398_v12 = vsub.f32 1.0, %v1578_v9  ;;  %v1584_v13 = vld [vmem:[%s1557_s13 + $0x40] sm:$0xff]  ;;  %v1587_v14 = vld [vmem:[%s1557_s13 + $0x38] sm:$0xff]  ;;  %v1590_v15 = vld [vmem:[%s1557_s13 + $0x30] sm:$0xff] }
  0x19   : > { %453 = vperm.xlu2 %1387, %v401_v4   ;;  %443 = vperm.xlu1 %1386, %v399_v5   ;;  %v405_v16 = vsub.f32 1.0, %v1584_v13  ;;  %v404_v17 = vsub.f32 1.0, %v1587_v14  ;;  %v403_v18 = vsub.f32 1.0, %v1590_v15  ;;  %v1596_v19 = vld [vmem:[%s1557_s13 + $0x58] sm:$0xff]  ;;  %v1599_v20 = vld [vmem:[%s1557_s13 + $0x50] sm:$0xff]  ;;  %v1602_v21 = vld [vmem:[%s1557_s13 + $0x48] sm:$0xff]  ;;  %v347_v5 = vlaneseq }
  0x1a   : > { %433 = vperm.xlu0 %1385, %v397_v6   ;;  %v408_v22 = vsub.f32 1.0, %v1596_v19  ;;  %v407_v23 = vsub.f32 1.0, %v1599_v20  ;;  %v406_v24 = vsub.f32 1.0, %v1602_v21  ;;  %v1608_v25 = vld [vmem:[%s1557_s13 + $0x70] sm:$0xff]  ;;  %v1611_v26 = vld [vmem:[%s1557_s13 + $0x68] sm:$0xff]  ;;  %v1614_v27 = vld [vmem:[%s1557_s13 + $0x60] sm:$0xff] }
  0x1b   : > { %v411_v28 = vsub.f32 1.0, %v1608_v25  ;;  %v410_v29 = vsub.f32 1.0, %v1611_v26  ;;  %v409_v30 = vsub.f32 1.0, %v1614_v27  ;;  %v1627_v31 = vld [vmem:[%s1623_s16 + $0x8] sm:$0xff]  ;;  %v1630_v32 = vld [vmem:[%s1623_s16] sm:$0xff]  ;;  %v1635_v33 = vld [vmem:[%s1557_s13 + $0x78] sm:$0xff] }
  0x1c   : > { %vm414_vm0 = vcmp.eq.s32.totalorder %v1627_v31, 0  ;;  %vm413_vm1 = vcmp.eq.s32.totalorder %v1630_v32, 0  ;;  %v412_v36 = vsub.f32 1.0, %v1635_v33  ;;  %v1641_v37 = vld [vmem:[%s1623_s16 + $0x20] sm:$0xff]  ;;  %v1644_v38 = vld [vmem:[%s1623_s16 + $0x18] sm:$0xff]  ;;  %v1647_v39 = vld [vmem:[%s1623_s16 + $0x10] sm:$0xff] }
  0x1d   : > { %v614_v34 = vsel %vm414_vm0, 1, %v1460_v0  ;;  %v613_v35 = vsel %vm413_vm1, 1, %v1460_v0  ;;  %vm417_vm2 = vcmp.eq.s32.totalorder %v1641_v37, 0  ;;  %vm416_vm3 = vcmp.eq.s32.totalorder %v1644_v38, 0  ;;  %v1656_v43 = vld [vmem:[%s1623_s16 + $0x38] sm:$0xff]  ;;  %v1659_v44 = vld [vmem:[%s1623_s16 + $0x30] sm:$0xff] }
  0x1e   : > { %vm415_vm4 = vcmp.eq.s32.totalorder %v1647_v39, 0  ;;  %v617_v40 = vsel %vm417_vm2, 1, %v1460_v0  ;;  %v616_v41 = vsel %vm416_vm3, 1, %v1460_v0  ;;  %v1662_v45 = vld [vmem:[%s1623_s16 + $0x28] sm:$0xff]  ;;  %vm420_vm5 = vcmp.eq.s32.totalorder %v1656_v43, 0  ;;  %v1671_v49 = vld [vmem:[%s1623_s16 + $0x50] sm:$0xff] }
  0x1f   : > { %v615_v42 = vsel %vm415_vm4, 1, %v1460_v0  ;;  %vm419_vm6 = vcmp.eq.s32.totalorder %v1659_v44, 0  ;;  %vm418_vm7 = vcmp.eq.s32.totalorder %v1662_v45, 0  ;;  %v620_v46 = vsel %vm420_vm5, 1, %v1460_v0  ;;  %v1674_v50 = vld [vmem:[%s1623_s16 + $0x48] sm:$0xff]  ;;  %v1677_v51 = vld [vmem:[%s1623_s16 + $0x40] sm:$0xff] }
  0x20   : > { %v619_v47 = vsel %vm419_vm6, 1, %v1460_v0  ;;  %v618_v48 = vsel %vm418_vm7, 1, %v1460_v0  ;;  %vm423_vm8 = vcmp.eq.s32.totalorder %v1671_v49, 0  ;;  %vm422_vm9 = vcmp.eq.s32.totalorder %v1674_v50, 0  ;;  %v1686_v55 = vld [vmem:[%s1623_s16 + $0x68] sm:$0xff]  ;;  %v1689_v56 = vld [vmem:[%s1623_s16 + $0x60] sm:$0xff] }
  0x21   : > { %458 = vperm.xlu2 %1387, %v402_v10   ;;  %448 = vperm.xlu1 %1386, %v400_v11   ;;  %vm421_vm10 = vcmp.eq.s32.totalorder %v1677_v51, 0  ;;  %v623_v52 = vsel %vm423_vm8, 1, %v1460_v0  ;;  %v622_v53 = vsel %vm422_vm9, 1, %v1460_v0  ;;  %v1692_v57 = vld [vmem:[%s1623_s16 + $0x58] sm:$0xff]  ;;  %vm426_vm11 = vcmp.eq.s32.totalorder %v1686_v55, 0  ;;  %v1704_v62 = vld [vmem:[%s1623_s16 + $0x70] sm:$0xff] }
  0x22   : > { %438 = vperm.xlu0 %1385, %v398_v12   ;;  %v621_v54 = vsel %vm421_vm10, 1, %v1460_v0  ;;  %vm425_vm12 = vcmp.eq.s32.totalorder %v1689_v56, 0  ;;  %vm424_vm13 = vcmp.eq.s32.totalorder %v1692_v57, 0  ;;  %v626_v58 = vsel %vm426_vm11, 1, %v1460_v0  ;;  %v1701_v61 = vld [vmem:[%s1623_s16 + $0x78] sm:$0xff]  ;;  %s2224_s13 = scalar_lea.vmem [#allocation2], %s1318_s12 }
  0x23   : > { %v625_v59 = vsel %vm425_vm12, 1, %v1460_v0  ;;  %v624_v60 = vsel %vm424_vm13, 1, %v1460_v0  ;;  %vm428_vm14 = vcmp.eq.s32.totalorder %v1701_v61, 0  ;;  %vm427_vm15 = vcmp.eq.s32.totalorder %v1704_v62, 0  ;;  %s1240_s12 = sshll.u32 %s2224_s13, 4  ;;  %s1242_s14 = sshll.u32 %s1238_s10, 4  ;;  %s1241_s12 = int_to_ptr.vmem [resolvable:$true] %s1240_s12  ;;  %s1243_s14 = int_to_ptr.hbm [resolvable:$true] %s1242_s14 }
  0x24   : > { %v628_v63 = vsel %vm428_vm14, 1, %v1460_v0  ;;  %v627_v4 = vsel %vm427_vm15, 1, %v1460_v0  ;;  %v1712_v6 = vshrl.u32 %v347_v5, 7  ;;  %v1714_v10 = vstv %s1323_s17  ;;  %s1410_s16 = sshra.s32 %s1243_s14, 4  ;;  %s1411_s16 = int_to_ptr.hbm [resolvable:$true] %s1410_s16 }
  0x25   : > { %vm780_vm1 = vcmp.eq.s32.totalorder %v1627_v31, 1  ;;  %vm779_vm3 = vcmp.eq.s32.totalorder %v1630_v32, 1  ;;  %vm1145_vm6 = vcmask 7168   ;;  %vm781_vm8 = vcmp.eq.s32.totalorder %v1647_v39, 1  ;;  %s1412_s25 = scalar_lea.hbm %s1411_s16, 4  ;;  %p1417_p0 = scmp.lt.s32.totalorder %s1411_s16, %s2451_s6 }
  0x26   : > { %v349_v11 = vadd.s32 8, %v1712_v6  ;;  %vm782_vm10 = vcmp.eq.s32.totalorder %v1644_v38, 1  ;;  %vm783_vm14 = vcmp.eq.s32.totalorder %v1641_v37, 1  ;;  %v979_v31 = vsel %vm779_vm3, 1, %v1460_v0  ;;  %p1413_p11 = scmp.ne.s32.totalorder %s1411_s16, %s1412_s25  ;;  %p1418_p1 = scmp.lt.s32.totalorder %s1416_s19, %s1412_s25 }
  0x27   : > { %v982_v37 = vsel %vm782_vm10, 1, %v1460_v0 }
  0x28   : > { %v1721_v12 = vadd.s32 %v1714_v10, %v349_v11  ;;  %v358_v11 = vadd.s32 80, %v1712_v6  ;;  %p1414_p12 = pnand %p1413_p11, %p1535_p5  ;;  %p1419_p2 = por %p1418_p1, %p1417_p0 }
  0x29   : > { %473 = vperm.xlu2 %1387, %v405_v16   ;;  %468 = vperm.xlu1 %1386, %v404_v17   ;;  %v350_v16 = vadd.s32 16, %v1712_v6 }
  0x2a   : > { %463 = vperm.xlu0 %1385, %v403_v18   ;;  %vm382_vm0 = vcmp.lt.s32.totalorder %v1721_v12, 333  ;;  %p1415_p13 = pneg %p1414_p12 }
  0x2b   : > { %vm1114_vm4 = vmand %vm780_vm1, %vm382_vm0 }
  0x2c   : > { %p1420_p3 = pnand %p1419_p2, %p1415_p13 }
  0x31   : > { %488 = vperm.xlu2 %1387, %v408_v22   ;;  %483 = vperm.xlu1 %1386, %v407_v23   ;;  %v352_v22 = vadd.s32 32, %v1712_v6 }
  0x32   : > { %478 = vperm.xlu0 %1385, %v406_v24  }
  0x39   : > { %503 = vperm.xlu2 %1387, %v411_v28   ;;  %498 = vperm.xlu1 %1386, %v410_v29   ;;  %v1766_v28 = vadd.s32 %v1714_v10, %v352_v22  ;;  %v353_v29 = vadd.s32 40, %v1712_v6  ;;  %v357_v22 = vadd.s32 72, %v1712_v6 }
  0x3a   : > { %493 = vperm.xlu0 %1385, %v409_v30  }
  0x3b   : > { %vm2453_vm13 = vcmp.lt.s32.totalorder %v1766_v28, 333 }
  0x3c   : > { %vm1117_vm15 = vmand %vm783_vm14, %vm2453_vm13 }
  0x41   : > { %633 = vperm.xlu2 %1387, %v614_v34   ;;  %630 = vperm.xlu1 %1386, %v613_v35   ;;  %v1782_v35 = vadd.s32 %v1714_v10, %v353_v29  ;;  %v359_v29 = vadd.s32 88, %v1712_v6 }
  0x42   : > { %508 = vperm.xlu0 %1385, %v412_v36   ;;  %v354_v36 = vadd.s32 48, %v1712_v6 }
  0x43   : > { %v1878_v32 = vadd.s32 %v1714_v10, %v359_v29 }
  0x49   : > { %642 = vperm.xlu2 %1387, %v617_v40   ;;  %639 = vperm.xlu1 %1386, %v616_v41   ;;  %v355_v41 = vadd.s32 56, %v1712_v6 }
  0x4a   : > { %636 = vperm.xlu0 %1385, %v615_v42   ;;  %v1797_v42 = vadd.s32 %v1714_v10, %v354_v36  ;;  %v1872_v36 = vadd.s32 %v1714_v10, %v357_v22  ;;  %v360_v22 = vadd.s32 96, %v1712_v6 }
  0x51   : > { %651 = vperm.xlu2 %1387, %v620_v46   ;;  %648 = vperm.xlu1 %1386, %v619_v47  }
  0x52   : > { %645 = vperm.xlu0 %1385, %v618_v48   ;;  %v356_v48 = vadd.s32 64, %v1712_v6 }
  0x59   : > { %660 = vperm.xlu2 %1387, %v623_v52   ;;  %657 = vperm.xlu1 %1386, %v622_v53   ;;  %v1810_v53 = vadd.s32 %v1714_v10, %v355_v41 }
  0x5a   : > { %654 = vperm.xlu0 %1385, %v621_v54  }
  0x5b   : > { %vm2459_vm13 = vcmp.lt.s32.totalorder %v1810_v53, 333 }
  0x61   : > { %669 = vperm.xlu2 %1387, %v626_v58   ;;  %666 = vperm.xlu1 %1386, %v625_v59  }
  0x62   : > { %663 = vperm.xlu0 %1385, %v624_v60   ;;  %v1829_v60 = vadd.s32 %v1714_v10, %v356_v48  ;;  %v983_v48 = vsel %vm783_vm14, 1, %v1460_v0 }
  0x69   : > { %675 = vperm.xlu1 %1386, %v628_v63   ;;  %799 = vperm.xlu2 %1387, %v1566_v3   ;;  %v1726_v3 = vadd.s32 %v1714_v10, %v1712_v6 }
  0x6a   : > { %672 = vperm.xlu0 %1385, %v627_v4  }
  0x6b   : > { %vm381_vm2 = vcmp.lt.s32.totalorder %v1726_v3, 333 }
  0x6c   : > { %vm1113_vm5 = vmand %vm779_vm3, %vm381_vm2  ;;  %vm2458_vm3 = vcmp.lt.s32.totalorder %v1872_v36, 333 }
  0x71   : > { %809 = vperm.xlu1 %1386, %v1563_v2   ;;  %814 = vperm.xlu2 %1387, %v1575_v8   ;;  %v1735_v2 = vadd.s32 %v1714_v10, %v350_v16  ;;  %v351_v8 = vadd.s32 24, %v1712_v6 }
  0x72   : > { %804 = vperm.xlu0 %1385, %v1578_v9   ;;  %v1461_v9 = vmov 0.0  }
  0x73   : > { %v1728_v17 = vpop.permute.xlu2 %453  ;;  %v1130_v18 = vsel %vm1114_vm4, 1.0, %v1461_v9  ;;  %vm2456_vm7 = vcmp.lt.s32.totalorder %v1735_v2, 333  ;;  %v1129_v24 = vsel %vm1113_vm5, 1.0, %v1461_v9  ;;  %vm784_vm4 = vcmp.eq.s32.totalorder %v1662_v45, 1 }
  0x74   : > { %vm1115_vm9 = vmand %vm781_vm8, %vm2456_vm7  ;;  %vm2452_vm5 = vcmp.lt.s32.totalorder %v1782_v35, 333  ;;  %v1133_v47 = vsel %vm1117_vm15, 1.0, %v1461_v9  ;;  %vm785_vm15 = vcmp.eq.s32.totalorder %v1659_v44, 1  ;;  %vm787_vm7 = vcmp.eq.s32.totalorder %v1677_v51, 1  ;;  %v1974_v44 = vld [vmem:[%s2447_s2] ss:$0 sm:$0xff] }
  0x75   : > { %v1131_v30 = vsel %vm1115_vm9, 1.0, %v1461_v9  ;;  %vm1118_vm9 = vmand %vm784_vm4, %vm2452_vm5  ;;  %v1153_v54 = vsel %vm1145_vm6, %v1133_v47, 0.0  ;;  %v363_v47 = vadd.s32 120, %v1712_v6 }
  0x76   : > { %v1134_v59 = vsel %vm1118_vm9, 1.0, %v1461_v9 }
  0x77   : > { %v1155_v63 = vsel %vm1145_vm6, %v1134_v59, 0.0 }
  0x79   : > { %824 = vperm.xlu1 %1386, %v1572_v7   ;;  %829 = vperm.xlu2 %1387, %v1590_v15   ;;  %v1147_v7 = vsel %vm1145_vm6, %v1130_v18, 0.0  ;;  %v1146_v15 = vsel %vm1145_vm6, %v1129_v24, 0.0  ;;  %v981_v24 = vsel %vm781_vm8, 1, %v1460_v0 }
  0x7a   : > { %819 = vperm.xlu0 %1385, %v1560_v1   ;;  %v1762_v1 = vadd.s32 %v1714_v10, %v351_v8  ;;  %v1148_v34 = vadd.f32 %v1147_v7, %v1146_v15  ;;  %v1863_v15 = vadd.s32 %v1714_v10, %v358_v11 }
  0x7b   : > { %v1753_v23 = vpop.permute.xlu2 %458 }
  0x7c   : > { %vm2454_vm11 = vcmp.lt.s32.totalorder %v1762_v1, 333  ;;  %vm2461_vm8 = vcmp.lt.s32.totalorder %v1863_v15, 333 }
  0x7d   : > { %vm1116_vm12 = vmand %vm782_vm10, %vm2454_vm11  ;;  %vm786_vm11 = vcmp.eq.s32.totalorder %v1656_v43, 1  ;;  %v1956_v43 = vadd.s32 %v1714_v10, %v360_v22 }
  0x7e   : > { %v1132_v40 = vsel %vm1116_vm12, 1.0, %v1461_v9  ;;  %vm2455_vm12 = vcmp.lt.s32.totalorder %v1797_v42, 333  ;;  %vm1120_vm9 = vmand %vm786_vm11, %vm2459_vm13  ;;  %vm790_vm13 = vcmp.eq.s32.totalorder %v1692_v57, 1  ;;  %v986_v29 = vsel %vm786_vm11, 1, %v1460_v0  ;;  %v2024_v57 = vld [vmem:[%s2449_s4] ss:$0 sm:$0xff] }
  0x7f   : > { %v1151_v46 = vsel %vm1145_vm6, %v1132_v40, 0.0  ;;  %vm1119_vm5 = vmand %vm785_vm15, %vm2455_vm12  ;;  %vm2457_vm12 = vcmp.lt.s32.totalorder %v1829_v60, 333  ;;  %v1136_v18 = vsel %vm1120_vm9, 1.0, %v1461_v9  ;;  %vm789_vm9 = vcmp.eq.s32.totalorder %v1671_v49, 1 }
  0x80   : > { %v1135_v4 = vsel %vm1119_vm5, 1.0, %v1461_v9  ;;  %vm1121_vm5 = vmand %vm787_vm7, %vm2457_vm12  ;;  %vm791_vm11 = vcmp.eq.s32.totalorder %v1689_v56, 1  ;;  %v990_v22 = vsel %vm790_vm13, 1, %v1460_v0 }
  0x81   : > { %839 = vperm.xlu1 %1386, %v1584_v13   ;;  %844 = vperm.xlu2 %1387, %v1602_v21   ;;  %v1149_v21 = vsel %vm1145_vm6, %v1131_v30, 0.0  ;;  %v1159_v30 = vsel %vm1145_vm6, %v1136_v18, 0.0  ;;  %vm1123_vm12 = vmand %vm789_vm9, %vm2461_vm8 }
  0x82   : > { %834 = vperm.xlu0 %1385, %v1587_v14   ;;  %v1150_v14 = vadd.f32 %v1149_v21, %v1148_v34  ;;  %v1137_v34 = vsel %vm1121_vm5, 1.0, %v1461_v9 }
  0x83   : > { %v1785_v13 = vpop.permute.xlu2 %473 }
  0x84   : > { %v1152_v52 = vadd.f32 %v1151_v46, %v1150_v14  ;;  %v1161_v14 = vsel %vm1145_vm6, %v1137_v34, 0.0  ;;  %v361_v46 = vadd.s32 104, %v1712_v6 }
  0x89   : > { %854 = vperm.xlu1 %1386, %v1596_v19   ;;  %859 = vperm.xlu2 %1387, %v1614_v27  }
  0x8a   : > { %849 = vperm.xlu0 %1385, %v1599_v20   ;;  %v1154_v20 = vadd.f32 %v1153_v54, %v1152_v52  ;;  %v984_v52 = vsel %vm784_vm4, 1, %v1460_v0  ;;  %vm792_vm4 = vcmp.eq.s32.totalorder %v1686_v55, 1 }
  0x8b   : > { %v1814_v19 = vpop.permute.xlu2 %488  ;;  %v1816_v27 = vpop.permute.xlu1 %443 }
  0x8c   : > { %v1819_v58 = vpop.permute.xlu0 %433  ;;  %v1156_v5 = vadd.f32 %v1155_v63, %v1154_v20  ;;  %v362_v20 = vadd.s32 112, %v1712_v6  ;;  %v1139_v63 = vsel %vm1123_vm12, 1.0, %v1461_v9  ;;  %v985_v6 = vsel %vm785_vm15, 1, %v1460_v0 }
  0x8d   : > { %vm393_vm15 = vcmp.lt.s32.totalorder %v1956_v43, 333 }
  0x8e   : > { %v1924_v11 = vadd.s32 %v1714_v10, %v362_v20 }
  0x90   : > { %vm395_vm8 = vcmp.lt.s32.totalorder %v1924_v11, 333 }
  0x91   : > { %869 = vperm.xlu1 %1386, %v1608_v25   ;;  %874 = vperm.xlu2 %1387, %v1635_v33   ;;  %v1157_v25 = vsel %vm1145_vm6, %v1135_v4, 0.0  ;;  %v1914_v4 = vadd.s32 %v1714_v10, %v361_v46 }
  0x92   : > { %864 = vperm.xlu0 %1385, %v1611_v26   ;;  %v980_v26 = vsel %vm780_vm1, 1, %v1460_v0  ;;  %v1158_v7 = vadd.f32 %v1157_v25, %v1156_v5  ;;  %vm788_vm1 = vcmp.eq.s32.totalorder %v1674_v50, 1  ;;  %v1917_v5 = vadd.s32 %v1714_v10, %v363_v47 }
  0x93   : > { %v1843_v16 = vpop.permute.xlu2 %503  ;;  %v1845_v8 = vpop.permute.xlu1 %448  ;;  %vm1122_vm5 = vmand %vm788_vm1, %vm2458_vm3  ;;  %vm2460_vm3 = vcmp.lt.s32.totalorder %v1878_v32, 333  ;;  %vm2462_vm10 = vcmp.lt.s32.totalorder %v1914_v4, 333 }
  0x94   : > { %v1848_v33 = vpop.permute.xlu0 %438  ;;  %v1160_v39 = vadd.f32 %v1159_v30, %v1158_v7  ;;  %v1138_v54 = vsel %vm1122_vm5, 1.0, %v1461_v9  ;;  %vm1124_vm14 = vmand %vm790_vm13, %vm2460_vm3  ;;  %vm2463_vm12 = vcmp.lt.s32.totalorder %v1917_v5, 333  ;;  %vm794_vm5 = vcmp.eq.s32.totalorder %v1701_v61, 1 }
  0x95   : > { %v1163_v45 = vsel %vm1145_vm6, %v1138_v54, 0.0  ;;  %v1140_v7 = vsel %vm1124_vm14, 1.0, %v1461_v9  ;;  %vm793_vm3 = vcmp.eq.s32.totalorder %v1704_v62, 1  ;;  %vm1126_vm14 = vmand %vm792_vm4, %vm2462_vm10  ;;  %v512_v49 = vsub.f32 %v1974_v44, %v1848_v33 }
  0x96   : > { %v1162_v59 = vadd.f32 %v1161_v14, %v1160_v39  ;;  %v1167_v34 = vsel %vm1145_vm6, %v1140_v7, 0.0  ;;  %vm1967_vm10 = vmand %vm794_vm5, %vm2463_vm12  ;;  %v1142_v10 = vsel %vm1126_vm14, 1.0, %v1461_v9  ;;  %v1981_v39 = vld [vmem:[%s2448_s3] ss:$0 sm:$0xff] }
  0x97   : > { %vm1125_vm12 = vmand %vm791_vm11, %vm393_vm15  ;;  %v531_v50 = vadd.f32 %v1981_v39, %v1816_v27 }
  0x98   : > { %v1164_v38 = vadd.f32 %v1163_v45, %v1162_v59  ;;  %v1171_v59 = vsel %vm1145_vm6, %v1142_v10, 0.0  ;;  %v511_v45 = vsub.f32 %v1974_v44, %v1819_v58 }
  0x99   : > { %999 = vperm.xlu1 %1386, %v980_v26   ;;  %1002 = vperm.xlu2 %1387, %v981_v24   ;;  %v1165_v26 = vsel %vm1145_vm6, %v1139_v63, 0.0 }
  0x9a   : > { %996 = vperm.xlu0 %1385, %v979_v31   ;;  %v987_v31 = vsel %vm787_vm7, 1, %v1460_v0  ;;  %v1166_v30 = vadd.f32 %v1165_v26, %v1164_v38  ;;  %vm1127_vm7 = vmand %vm793_vm3, %vm395_vm8  ;;  %v529_v38 = vadd.f32 %v1981_v39, %v1819_v58  ;;  %v989_v26 = vsel %vm789_vm9, 1, %v1460_v0 }
  0x9b   : > { %v1880_v21 = vpop.permute.xlu2 %633  ;;  %v1882_v40 = vpop.permute.xlu1 %468  ;;  %v545_v51 = vmax.f32 %v511_v45, 0.0  ;;  %v516_v45 = vsub.f32 %v1974_v44, %v1753_v23 }
  0x9c   : > { %v1886_v41 = vpop.permute.xlu0 %463  ;;  %v1168_v14 = vadd.f32 %v1167_v34, %v1166_v30  ;;  %v513_v34 = vsub.f32 %v1974_v44, %v1816_v27  ;;  %v532_v27 = vadd.f32 %v1981_v39, %v1845_v8  ;;  %vm678_vm13 = vcmp.eq.s32.totalorder %v1880_v21, 1 }
  0xa1   : > { %1008 = vperm.xlu1 %1386, %v983_v48   ;;  %1011 = vperm.xlu2 %1387, %v984_v52   ;;  %v1143_v48 = vsel %vm1127_vm7, 1.0, %v1461_v9  ;;  %v1141_v52 = vsel %vm1125_vm12, 1.0, %v1461_v9  ;;  %vm2471_vm7 = vcmp.lt.s32.totalorder %v1782_v35, 333 }
  0xa2   : > { %1005 = vperm.xlu0 %1385, %v982_v37   ;;  %v1169_v20 = vsel %vm1145_vm6, %v1141_v52, 0.0  ;;  %v1144_v37 = vsel %vm1967_vm10, 1.0, %v1461_v9  ;;  %v1173_v7 = vsel %vm1145_vm6, %v1143_v48, 0.0  ;;  %v579_v48 = vmax.f32 %v529_v38, 0.0 }
  0xa3   : > { %v1926_v25 = vpop.permute.xlu2 %642  ;;  %v1928_v18 = vpop.permute.xlu1 %483  ;;  %v1170_v63 = vadd.f32 %v1169_v20, %v1168_v14  ;;  %v1175_v58 = vsel %vm1145_vm6, %v1144_v37, 0.0  ;;  %v2033_v14 = vld [vmem:[%s2450_s5] ss:$0 sm:$0xff]  ;;  %vm2468_vm10 = vcmp.lt.s32.totalorder %v1735_v2, 333 }
  0xa4   : > { %v1934_v24 = vpop.permute.xlu0 %478 }
  0xa5   : > { %v1172_v30 = vadd.f32 %v1171_v59, %v1170_v63  ;;  %v514_v59 = vsub.f32 %v1974_v44, %v1845_v8  ;;  %v2047_v63 = vadd.f32 %v1981_v39, %v1753_v23  ;;  %v597_v8 = vmul.f32 %v2033_v14, %v579_v48 }
  0xa6   : > { %v993_v23 = vsel %vm793_vm3, 1, %v1460_v0  ;;  %vm681_vm3 = vcmp.eq.s32.totalorder %v1926_v25, 1 }
  0xa7   : > { %v1174_v10 = vadd.f32 %v1173_v7, %v1172_v30  ;;  %v547_v7 = vmax.f32 %v513_v34, 0.0  ;;  %v992_v30 = vsel %vm792_vm4, 1, %v1460_v0  ;;  %v991_v34 = vsel %vm791_vm11, 1, %v1460_v0 }
  0xa8   : > { %vm2469_vm4 = vcmp.lt.s32.totalorder %v1762_v1, 333 }
  0xa9   : > { %1017 = vperm.xlu1 %1386, %v986_v29   ;;  %1020 = vperm.xlu2 %1387, %v987_v31   ;;  %v515_v29 = vsub.f32 %v1974_v44, %v1728_v17  ;;  %v988_v31 = vsel %vm788_vm1, 1, %v1460_v0  ;;  %v1176_v37 = vadd.f32 %v1175_v58, %v1174_v10  ;;  %v565_v21 = vmul.f32 %v2024_v57, %v547_v7 }
  0xaa   : > { %1014 = vperm.xlu0 %1385, %v985_v6   ;;  %v530_v6 = vadd.f32 %v1981_v39, %v1848_v33  ;;  %v2037_v33 = vadd.f32 %v1981_v39, %v1728_v17  ;;  %v546_v17 = vmax.f32 %v512_v49, 0.0  ;;  %v548_v49 = vmax.f32 %v514_v59, 0.0 }
  0xab   : > { %v1987_v46 = vpop.permute.xlu2 %651  ;;  %v1989_v47 = vpop.permute.xlu1 %498  ;;  %v549_v52 = vmax.f32 %v515_v29, 0.0  ;;  %v581_v29 = vmax.f32 %v531_v50, 0.0  ;;  %v1177_v58 = vrot.slane %v1176_v37, 4  ;;  %v584_v59 = vmax.f32 %v2047_v63, 0.0 }
  0xac   : > { %v1993_v54 = vpop.permute.xlu0 %493  ;;  %v564_v50 = vmul.f32 %v2024_v57, %v546_v17  ;;  %v583_v62 = vmax.f32 %v2037_v33, 0.0  ;;  %v535_v63 = vadd.f32 %v1981_v39, %v1886_v41  ;;  %vm684_vm11 = vcmp.eq.s32.totalorder %v1987_v46, 1 }
  0xad   : > { %v1178_v55 = vadd.f32 %v1177_v58, %v1176_v37  ;;  %v567_v48 = vmul.f32 %v2024_v57, %v549_v52  ;;  %v599_v17 = vmul.f32 %v2033_v14, %v581_v29  ;;  %v517_v37 = vsub.f32 %v1974_v44, %v1886_v41 }
  0xae   : > { %v602_v61 = vmul.f32 %v2033_v14, %v584_v59 }
  0xaf   : > { %v1179_v56 = vrot.slane %v1178_v55, 2  ;;  %v551_v41 = vmax.f32 %v517_v37, 0.0 }
  0xb1   : > { %1026 = vperm.xlu1 %1386, %v989_v26   ;;  %1029 = vperm.xlu2 %1387, %v990_v22   ;;  %v580_v26 = vmax.f32 %v530_v6, 0.0  ;;  %v582_v6 = vmax.f32 %v532_v27, 0.0 }
  0xb2   : > { %1023 = vperm.xlu0 %1385, %v988_v31   ;;  %v563_v31 = vmul.f32 %v2024_v57, %v545_v51 }
  0xb3   : > { %v631_v20 = vpop.permute.xlu1 %630  ;;  %v2049_v38 = vpop.permute.xlu2 %660  ;;  %v598_v51 = vmul.f32 %v2033_v14, %v580_v26  ;;  %v566_v26 = vmul.f32 %v2024_v57, %v548_v49 }
  0xb4   : > { %v2051_v22 = vpop.permute.xlu0 %508  ;;  %vm677_vm6 = vcmp.eq.s32.totalorder %v631_v20, 1  ;;  %v550_v20 = vmax.f32 %v516_v45, 0.0  ;;  %v600_v45 = vmul.f32 %v2033_v14, %v582_v6 }
  0xb5   : > { %v693_v10 = vsel %vm677_vm6, %v563_v31, %v597_v8  ;;  %v694_v27 = vsel %vm678_vm13, %v564_v50, %v598_v51  ;;  %v1180_v31 = vadd.f32 %v1179_v56, %v1178_v55  ;;  %v518_v8 = vsub.f32 %v1974_v44, %v1882_v40 }
  0xb6   : > { %v741_v33 = vsel %vm381_vm2, %v693_v10, 0.0  ;;  %v742_v29 = vsel %vm382_vm0, %v694_v27, 0.0  ;;  %v994_v51 = vsel %vm794_vm5, 1, %v1460_v0  ;;  %v601_v10 = vmul.f32 %v2033_v14, %v583_v62 }
  0xb7   : > { %v519_v56 = vsub.f32 %v1974_v44, %v1785_v13  ;;  %v568_v0 = vmul.f32 %v2024_v57, %v550_v20  ;;  %vm2470_vm5 = vcmp.lt.s32.totalorder %v1766_v28, 333  ;;  %vm2472_vm6 = vcmp.lt.s32.totalorder %v1797_v42, 333 }
  0xb9   : > { %1035 = vperm.xlu1 %1386, %v992_v30   ;;  %1038 = vperm.xlu2 %1387, %v993_v23   ;;  %v536_v30 = vadd.f32 %v1981_v39, %v1882_v40  ;;  %v757_v23 = vadd.f32 %v742_v29, %v741_v33  ;;  %v585_v40 = vmax.f32 %v535_v63, 0.0  ;;  %v569_v33 = vmul.f32 %v2024_v57, %v551_v41 }
  0xba   : > { %1032 = vperm.xlu0 %1385, %v991_v34   ;;  %v1181_v34 = vrot.slane %v1180_v31, 1  ;;  %v538_v63 = vadd.f32 %v1981_v39, %v1934_v24 }
  0xbb   : > { %v640_v52 = vpop.permute.xlu1 %639  ;;  %v2086_v58 = vpop.permute.xlu2 %669  ;;  %v586_v62 = vmax.f32 %v536_v30, 0.0 }
  0xbc   : > { %vm680_vm1 = vcmp.eq.s32.totalorder %v640_v52, 1  ;;  %v637_v7 = vpop.permute.xlu0 %636  ;;  %v1182_v27 = vadd.f32 %v1181_v34, %v1180_v31  ;;  %v588_v41 = vmax.f32 %v538_v63, 0.0 }
  0xbd   : > { %vm679_vm9 = vcmp.eq.s32.totalorder %v637_v7, 1  ;;  %v696_v49 = vsel %vm680_vm1, %v566_v26, %v600_v45  ;;  %v697_v26 = vsel %vm681_vm3, %v567_v48, %v601_v10  ;;  %v603_v45 = vmul.f32 %v2033_v14, %v585_v40 }
  0xbe   : > { %v695_v6 = vsel %vm679_vm9, %v565_v21, %v599_v17  ;;  %v537_v21 = vadd.f32 %v1981_v39, %v1785_v13  ;;  %v744_v25 = vsel %vm2469_vm4, %v696_v49, 0.0  ;;  %v552_v17 = vmax.f32 %v518_v8, 0.0 }
  0xbf   : > { %v743_v50 = vsel %vm2468_vm10, %v695_v6, 0.0  ;;  %v520_v13 = vsub.f32 %v1974_v44, %v1934_v24  ;;  %v553_v7 = vmax.f32 %v519_v56, 0.0  ;;  %v745_v20 = vsel %vm2470_vm5, %v697_v26, 0.0 }
  0xc0   : > { %v758_v55 = vadd.f32 %v757_v23, %v743_v50  ;;  %v587_v31 = vmax.f32 %v537_v21, 0.0  ;;  %v570_v59 = vmul.f32 %v2024_v57, %v552_v17  ;;  %v521_v23 = vsub.f32 %v1974_v44, %v1928_v18 }
  0xc1   : > { %1185 = vperm.xlu1 %1386, %v1182_v27   ;;  %v539_v49 = vadd.f32 %v1981_v39, %v1928_v18  ;;  %v604_v6 = vmul.f32 %v2033_v14, %v586_v62  ;;  %v554_v34 = vmax.f32 %v520_v13, 0.0  ;;  %v522_v10 = vsub.f32 %v1974_v44, %v1814_v19 }
  0xc2   : > { %v759_v37 = vadd.f32 %v758_v55, %v744_v25  ;;  %1041 = vperm.xlu0 %1385, %v994_v51   ;;  %v540_v40 = vadd.f32 %v1981_v39, %v1814_v19  ;;  %v571_v46 = vmul.f32 %v2024_v57, %v553_v7  ;;  %v605_v56 = vmul.f32 %v2033_v14, %v587_v31 }
  0xc3   : > { %v649_v52 = vpop.permute.xlu1 %648  ;;  %v2120_v50 = vpop.permute.xlu2 %799  ;;  %v700_v55 = vsel %vm684_vm11, %v570_v59, %v604_v6  ;;  %v555_v21 = vmax.f32 %v521_v23, 0.0  ;;  %v589_v25 = vmax.f32 %v539_v49, 0.0  ;;  %v523_v17 = vsub.f32 %v1974_v44, %v1993_v54 }
  0xc4   : > { %vm683_vm12 = vcmp.eq.s32.totalorder %v649_v52, 1  ;;  %v646_v48 = vpop.permute.xlu0 %645  ;;  %v760_v8 = vadd.f32 %v759_v37, %v745_v20  ;;  %v572_v37 = vmul.f32 %v2024_v57, %v554_v34  ;;  %v541_v19 = vadd.f32 %v1981_v39, %v1993_v54 }
  0xc5   : > { %vm682_vm14 = vcmp.eq.s32.totalorder %v646_v48, 1  ;;  %v699_v29 = vsel %vm683_vm12, %v569_v33, %v603_v45  ;;  %v556_v62 = vmax.f32 %v522_v10, 0.0  ;;  %v590_v33 = vmax.f32 %v540_v40, 0.0 }
  0xc6   : > { %v698_v30 = vsel %vm682_vm14, %v568_v0, %v602_v61  ;;  %v747_v18 = vsel %vm2472_vm6, %v699_v29, 0.0  ;;  %v606_v0 = vmul.f32 %v2033_v14, %v588_v41  ;;  %vm2473_vm1 = vcmp.lt.s32.totalorder %v1810_v53, 333 }
  0xc7   : > { %v746_v24 = vsel %vm2471_vm7, %v698_v30, 0.0  ;;  %v748_v52 = vsel %vm2473_vm1, %v700_v55, 0.0  ;;  %v524_v45 = vsub.f32 %v1974_v44, %v1989_v47  ;;  %v542_v7 = vadd.f32 %v1981_v39, %v1989_v47 }
  0xc8   : > { %v761_v51 = vadd.f32 %v760_v8, %v746_v24  ;;  %v557_v31 = vmax.f32 %v523_v17, 0.0  ;;  %vm687_vm3 = vcmp.eq.s32.totalorder %v2049_v38, 1  ;;  %vm2474_vm10 = vcmp.lt.s32.totalorder %v1829_v60, 333 }
  0xc9   : > { %v573_v20 = vmul.f32 %v2024_v57, %v555_v21  ;;  %v607_v59 = vmul.f32 %v2033_v14, %v589_v25  ;;  %v591_v29 = vmax.f32 %v541_v19, 0.0  ;;  %v574_v30 = vmul.f32 %v2024_v57, %v556_v62 }
  0xca   : > { %v762_v27 = vadd.f32 %v761_v51, %v747_v18  ;;  %v1325_v23 = vsel %vm382_vm0, 1.0, %v1461_v9  ;;  %v1324_v47 = vsel %vm381_vm2, 1.0, %v1461_v9  ;;  %vm2475_vm4 = vcmp.lt.s32.totalorder %v1872_v36, 333 }
  0xcb   : > { %v658_v26 = vpop.permute.xlu1 %657  ;;  %v608_v49 = vmul.f32 %v2033_v14, %v590_v33  ;;  %v525_v24 = vsub.f32 %v1974_v44, %v1843_v16  ;;  %v703_v6 = vsel %vm687_vm3, %v573_v20, %v607_v59  ;;  %v2159_v34 = vpop.permute.xlu2 %814  ;;  %v543_v51 = vadd.f32 %v1981_v39, %v1843_v16 }
  0xcc   : > { %vm686_vm13 = vcmp.eq.s32.totalorder %v658_v26, 1  ;;  %v655_v61 = vpop.permute.xlu0 %654  ;;  %v763_v63 = vadd.f32 %v762_v27, %v748_v52  ;;  %v558_v10 = vmax.f32 %v524_v45, 0.0  ;;  %v592_v40 = vmax.f32 %v542_v7, 0.0 }
  0xcd   : > { %vm685_vm9 = vcmp.eq.s32.totalorder %v655_v61, 1  ;;  %v702_v13 = vsel %vm686_vm13, %v572_v37, %v606_v0  ;;  %v575_v18 = vmul.f32 %v2024_v57, %v557_v31  ;;  %v609_v55 = vmul.f32 %v2033_v14, %v591_v29 }
  0xce   : > { %v701_v48 = vsel %vm685_vm9, %v571_v46, %v605_v56  ;;  %v750_v38 = vsel %vm2475_vm4, %v702_v13, 0.0  ;;  %v526_v27 = vsub.f32 %v1974_v44, %v2051_v22  ;;  %v544_v56 = vadd.f32 %v1981_v39, %v2051_v22 }
  0xcf   : > { %v749_v54 = vsel %vm2474_vm10, %v701_v48, 0.0  ;;  %vm2476_vm5 = vcmp.lt.s32.totalorder %v1735_v2, 333  ;;  %v1205_v16 = vadd.f32 %v1325_v23, %v1324_v47  ;;  %vm2477_vm14 = vcmp.lt.s32.totalorder %v1863_v15, 333 }
  0xd0   : > { %v764_v8 = vadd.f32 %v763_v63, %v749_v54  ;;  %v1326_v25 = vsel %vm2476_vm5, 1.0, %v1461_v9  ;;  %v751_v17 = vsel %vm2477_vm14, %v703_v6, 0.0  ;;  %v559_v26 = vmax.f32 %v525_v24, 0.0 }
  0xd1   : > { %v593_v61 = vmax.f32 %v543_v51, 0.0  ;;  %v576_v44 = vmul.f32 %v2024_v57, %v558_v10  ;;  %vm690_vm7 = vcmp.eq.s32.totalorder %v2086_v58, 1  ;;  %vm2478_vm6 = vcmp.lt.s32.totalorder %v1878_v32, 333 }
  0xd2   : > { %v765_v41 = vadd.f32 %v764_v8, %v750_v38  ;;  %v610_v22 = vmul.f32 %v2033_v14, %v592_v40  ;;  %v560_v62 = vmax.f32 %v526_v27, 0.0  ;;  %v594_v33 = vmax.f32 %v544_v56, 0.0 }
  0xd3   : > { %v667_v46 = vpop.permute.xlu1 %666  ;;  %v1206_v13 = vadd.f32 %v1326_v25, %v1205_v16  ;;  %v577_v7 = vmul.f32 %v2024_v57, %v559_v26  ;;  %vm2479_vm13 = vcmp.lt.s32.totalorder %v1762_v1, 333  ;;  %v611_v54 = vmul.f32 %v2033_v14, %v593_v61  ;;  %v2188_v29 = vpop.permute.xlu2 %829 }
  0xd4   : > { %vm689_vm12 = vcmp.eq.s32.totalorder %v667_v46, 1  ;;  %v664_v21 = vpop.permute.xlu0 %663  ;;  %v766_v0 = vadd.f32 %v765_v41, %v751_v17  ;;  %v706_v63 = vsel %vm690_vm7, %v576_v44, %v610_v22  ;;  %v1327_v58 = vsel %vm2479_vm13, 1.0, %v1461_v9 }
  0xd5   : > { %vm688_vm11 = vcmp.eq.s32.totalorder %v664_v21, 1  ;;  %v705_v37 = vsel %vm689_vm12, %v575_v18, %v609_v55  ;;  %v578_v20 = vmul.f32 %v2024_v57, %v560_v62  ;;  %v612_v59 = vmul.f32 %v2033_v14, %v594_v33 }
  0xd6   : > { %v704_v19 = vsel %vm688_vm11, %v574_v30, %v608_v49  ;;  %v753_v45 = vsel %vm393_vm15, %v705_v37, 0.0  ;;  %vm2480_vm9 = vcmp.lt.s32.totalorder %v1914_v4, 333  ;;  %v1207_v23 = vadd.f32 %v1327_v58, %v1206_v13 }
  0xd7   : > { %v752_v39 = vsel %vm2478_vm6, %v704_v19, 0.0  ;;  %v754_v30 = vsel %vm2480_vm9, %v706_v63, 0.0  ;;  %vm2481_vm10 = vcmp.lt.s32.totalorder %v1766_v28, 333  ;;  %vm2482_vm4 = vcmp.lt.s32.totalorder %v1917_v5, 333 }
  0xd8   : > { %v767_v52 = vadd.f32 %v766_v0, %v752_v39  ;;  %v1328_v24 = vsel %vm2481_vm10, 1.0, %v1461_v9  ;;  %vm2483_vm12 = vcmp.lt.s32.totalorder %v1782_v35, 333  ;;  %vm2484_vm5 = vcmp.lt.s32.totalorder %v1797_v42, 333 }
  0xd9   : > { %v1208_v41 = vadd.f32 %v1328_v24, %v1207_v23  ;;  %v1329_v10 = vsel %vm2483_vm12, 1.0, %v1461_v9  ;;  %v1330_v21 = vsel %vm2484_vm5, 1.0, %v1461_v9  ;;  %vm2485_vm14 = vcmp.lt.s32.totalorder %v1810_v53, 333 }
  0xda   : > { %v768_v48 = vadd.f32 %v767_v52, %v753_v45  ;;  %v1331_v26 = vsel %vm2485_vm14, 1.0, %v1461_v9  ;;  %vm2486_vm11 = vcmp.lt.s32.totalorder %v1829_v60, 333  ;;  %vm2487_vm7 = vcmp.lt.s32.totalorder %v1872_v36, 333 }
  0xdb   : > { %v676_v31 = vpop.permute.xlu1 %675  ;;  %v1209_v55 = vadd.f32 %v1329_v10, %v1208_v41  ;;  %v2204_v27 = vpop.permute.xlu2 %844  ;;  %v1332_v39 = vsel %vm2486_vm11, 1.0, %v1461_v9  ;;  %v1333_v33 = vsel %vm2487_vm7, 1.0, %v1461_v9  ;;  %vm2488_vm6 = vcmp.lt.s32.totalorder %v1863_v15, 333  ;;  %v2275_v10 = vld [vmem:[%s2449_s4 + $0x1] ss:$0 sm:$0xff] }
  0xdc   : > { %vm692_vm1 = vcmp.eq.s32.totalorder %v676_v31, 1  ;;  %v673_v8 = vpop.permute.xlu0 %672  ;;  %v769_v38 = vadd.f32 %v768_v48, %v754_v30  ;;  %v1334_v63 = vsel %vm2488_vm6, 1.0, %v1461_v9  ;;  %vm2489_vm13 = vcmp.lt.s32.totalorder %v1878_v32, 333 }
  0xdd   : > { %vm691_vm3 = vcmp.eq.s32.totalorder %v673_v8, 1  ;;  %v708_v47 = vsel %vm692_vm1, %v578_v20, %v612_v59  ;;  %v1210_v16 = vadd.f32 %v1330_v21, %v1209_v55  ;;  %v1335_v58 = vsel %vm2489_vm13, 1.0, %v1461_v9  ;;  %v2249_v59 = vld [vmem:[%s2447_s2 + $0x1] ss:$0 sm:$0xff]  ;;  %vm2490_vm1 = vmmov %vm2480_vm9 }
  0xde   : > { %v707_v49 = vsel %vm691_vm3, %v577_v7, %v611_v54  ;;  %v756_v6 = vsel %vm2482_vm4, %v708_v47, 0.0  ;;  %v2254_v8 = vld [vmem:[%s2448_s3 + $0x1] ss:$0 sm:$0xff]  ;;  %v1336_v30 = vsel %vm393_vm15, 1.0, %v1461_v9  ;;  %v877_v47 = vsub.f32 %v2249_v59, %v2120_v50  ;;  %vm2491_vm9 = vmmov %vm2482_vm4 }
  0xdf   : > { %v755_v57 = vsel %vm395_vm8, %v707_v49, 0.0  ;;  %v1211_v61 = vadd.f32 %v1331_v26, %v1210_v16  ;;  %v1337_v49 = vsel %vm2490_vm1, 1.0, %v1461_v9  ;;  %v898_v26 = vadd.f32 %v2254_v8, %v2159_v34 }
  0xe0   : > { %v770_v14 = vadd.f32 %v769_v38, %v755_v57  ;;  %v895_v38 = vadd.f32 %v2254_v8, %v2120_v50  ;;  %v2280_v50 = vld [vmem:[%s2450_s5 + $0x1] ss:$0 sm:$0xff]  ;;  %vm2493_vm14 = vcmp.lt.s32.totalorder %v1762_v1, 333  ;;  %vm2494_vm11 = vcmp.lt.s32.totalorder %v1766_v28, 333 }
  0xe1   : > { %v1212_v62 = vadd.f32 %v1332_v39, %v1211_v61  ;;  %vm2495_vm6 = vcmp.lt.s32.totalorder %v1782_v35, 333 }
  0xe2   : > { %v771_v51 = vadd.f32 %v770_v14, %v756_v6  ;;  %v945_v55 = vmax.f32 %v895_v38, 0.0 }
  0xe3   : > { %v2202_v40 = vpop.permute.xlu1 %809  ;;  %v2222_v22 = vpop.permute.xlu2 %859  ;;  %v1213_v13 = vadd.f32 %v1333_v33, %v1212_v62 }
  0xe4   : > { %v772_v18 = vrot.slane %v771_v51, 4  ;;  %v805_v46 = vpop.permute.xlu0 %804  ;;  %v879_v16 = vsub.f32 %v2249_v59, %v2202_v40  ;;  %v963_v39 = vmul.f32 %v2280_v50, %v945_v55 }
  0xe5   : > { %v1214_v48 = vadd.f32 %v1334_v63, %v1213_v13  ;;  %v878_v24 = vsub.f32 %v2249_v59, %v805_v46  ;;  %v896_v57 = vadd.f32 %v2254_v8, %v805_v46  ;;  %v1338_v46 = vsel %vm395_vm8, 1.0, %v1461_v9 }
  0xe6   : > { %v773_v56 = vadd.f32 %v772_v18, %v771_v51  ;;  %v911_v18 = vmax.f32 %v877_v47, 0.0  ;;  %v901_v47 = vadd.f32 %v2254_v8, %v2188_v29 }
  0xe7   : > { %v1215_v20 = vadd.f32 %v1335_v58, %v1214_v48  ;;  %v912_v21 = vmax.f32 %v878_v24, 0.0  ;;  %v913_v48 = vmax.f32 %v879_v16, 0.0 }
  0xe8   : > { %v774_v25 = vrot.slane %v773_v56, 2 }
  0xe9   : > { %v1216_v23 = vadd.f32 %v1336_v30, %v1215_v20  ;;  %v930_v33 = vmul.f32 %v2275_v10, %v912_v21  ;;  %v948_v20 = vmax.f32 %v898_v26, 0.0  ;;  %v883_v30 = vsub.f32 %v2249_v59, %v2188_v29 }
  0xea   : > { %v775_v17 = vadd.f32 %v774_v25, %v773_v56  ;;  %v880_v56 = vsub.f32 %v2249_v59, %v2159_v34  ;;  %v946_v25 = vmax.f32 %v896_v57, 0.0  ;;  %v931_v55 = vmul.f32 %v2275_v10, %v913_v48 }
  0xeb   : > { %v2215_v37 = vpop.permute.xlu1 %824  ;;  %v2237_v7 = vpop.permute.xlu2 %874  ;;  %v1217_v51 = vadd.f32 %v1337_v49, %v1216_v23  ;;  %v951_v26 = vmax.f32 %v901_v47, 0.0 }
  0xec   : > { %v776_v0 = vrot.slane %v775_v17, 1  ;;  %v2217_v19 = vpop.permute.xlu0 %819  ;;  %v914_v62 = vmax.f32 %v880_v56, 0.0  ;;  %v964_v13 = vmul.f32 %v2280_v50, %v946_v25  ;;  %v882_v38 = vsub.f32 %v2249_v59, %v2215_v37 }
  0xed   : > { %v1218_v61 = vadd.f32 %v1338_v46, %v1217_v51  ;;  %v899_v58 = vadd.f32 %v2254_v8, %v2217_v19  ;;  %v900_v49 = vadd.f32 %v2254_v8, %v2215_v37  ;;  %v966_v37 = vmul.f32 %v2280_v50, %v948_v20 }
  0xee   : > { %v777_v44 = vadd.f32 %v776_v0, %v775_v17  ;;  %v897_v17 = vadd.f32 %v2254_v8, %v2202_v40  ;;  %v1339_v0 = vsel %vm2491_vm9, 1.0, %v1461_v9  ;;  %v881_v40 = vsub.f32 %v2249_v59, %v2217_v19 }
  0xef   : > { %v949_v46 = vmax.f32 %v899_v58, 0.0  ;;  %v1219_v56 = vadd.f32 %v1339_v0, %v1218_v61  ;;  %v932_v21 = vmul.f32 %v2275_v10, %v914_v62  ;;  %v916_v25 = vmax.f32 %v882_v38, 0.0 }
  0xf0   : > { %778 = vst [vmem:[%s2224_s13] sm:$0x1] %v777_v44  ;;  %v929_v44 = vmul.f32 %v2275_v10, %v911_v18  ;;  %v947_v34 = vmax.f32 %v897_v17, 0.0  ;;  %v915_v19 = vmax.f32 %v881_v40, 0.0  ;;  %v950_v12 = vmax.f32 %v900_v49, 0.0 }
  0xf1   : > { %v886_v62 = vsub.f32 %v2249_v59, %v2204_v27  ;;  %v969_v49 = vmul.f32 %v2280_v50, %v951_v26  ;;  %vm2496_vm9 = vcmp.lt.s32.totalorder %v1797_v42, 333 }
  0xf2   : > { %v965_v29 = vmul.f32 %v2280_v50, %v947_v34 }
  0xf3   : > { %v2230_v52 = vpop.permute.xlu1 %839  ;;  %v1003_v6 = vpop.permute.xlu2 %1002 }
  0xf4   : > { %v2232_v45 = vpop.permute.xlu0 %834  ;;  %vm1045_vm4 = vcmp.eq.s32.totalorder %v1003_v6, 1  ;;  %v917_v6 = vmax.f32 %v883_v30, 0.0 }
  0xf5   : > { %v1061_v16 = vsel %vm1045_vm4, %v931_v55, %v965_v29  ;;  %v902_v0 = vadd.f32 %v2254_v8, %v2232_v45  ;;  %vm2498_vm4 = vcmp.lt.s32.totalorder %v1829_v60, 333 }
  0xf6   : > { %v935_v38 = vmul.f32 %v2275_v10, %v917_v6 }
  0xf7   : > { %v952_v30 = vmax.f32 %v902_v0, 0.0 }
  0xfb   : > { %v2242_v31 = vpop.permute.xlu1 %854  ;;  %v1012_v24 = vpop.permute.xlu2 %1011 }
  0xfc   : > { %v2244_v54 = vpop.permute.xlu0 %849  ;;  %vm1048_vm5 = vcmp.eq.s32.totalorder %v1012_v24, 1  ;;  %v906_v6 = vadd.f32 %v2254_v8, %v2242_v31 }
  0xfd   : > { %v887_v29 = vsub.f32 %v2249_v59, %v2244_v54 }
 0x103   : > { %v2268_v14 = vpop.permute.xlu1 %869 }
 0x104   : > { %v2270_v41 = vpop.permute.xlu0 %864  ;;  %v909_v60 = vadd.f32 %v2254_v8, %v2268_v14 }
 0x10b   : > { %v1000_v63 = vpop.permute.xlu1 %999 }
 0x10c   : > { %vm1044_vm3 = vcmp.eq.s32.totalorder %v1000_v63, 1  ;;  %v997_v9 = vpop.permute.xlu0 %996  ;;  %v934_v63 = vmul.f32 %v2275_v10, %v916_v25  ;;  %v970_v25 = vmul.f32 %v2280_v50, %v952_v30 }
 0x10d   : > { %v1060_v23 = vsel %vm1044_vm3, %v930_v33, %v964_v13  ;;  %vm1043_vm10 = vcmp.eq.s32.totalorder %v997_v9, 1  ;;  %v884_v33 = vsub.f32 %v2249_v59, %v2232_v45  ;;  %v904_v13 = vadd.f32 %v2254_v8, %v2204_v27 }
 0x10e   : > { %v1059_v57 = vsel %vm1043_vm10, %v929_v44, %v963_v39  ;;  %v1076_v51 = vsel %vm382_vm0, %v1060_v23, 0.0  ;;  %v933_v44 = vmul.f32 %v2275_v10, %v915_v19  ;;  %v967_v39 = vmul.f32 %v2280_v50, %v949_v46  ;;  %v1021_v23 = vpop.permute.xlu2 %1020 }
 0x10f   : > { %v1075_v18 = vsel %vm381_vm2, %v1059_v57, 0.0  ;;  %vm2492_vm2 = vcmp.lt.s32.totalorder %v1735_v2, 333  ;;  %v885_v45 = vsub.f32 %v2249_v59, %v2230_v52  ;;  %v903_v9 = vadd.f32 %v2254_v8, %v2230_v52 }
 0x110   : > { %v1091_v17 = vadd.f32 %v1076_v51, %v1075_v18  ;;  %v1077_v40 = vsel %vm2492_vm2, %v1061_v16, 0.0  ;;  %v968_v27 = vmul.f32 %v2280_v50, %v950_v12  ;;  %v918_v2 = vmax.f32 %v884_v33, 0.0 }
 0x111   : > { %v920_v57 = vmax.f32 %v886_v62, 0.0  ;;  %v954_v51 = vmax.f32 %v904_v13, 0.0  ;;  %v1220_v18 = vrot.slane %v1219_v56, 4  ;;  %v919_v1 = vmax.f32 %v885_v45, 0.0 }
 0x112   : > { %v1092_v34 = vadd.f32 %v1091_v17, %v1077_v40  ;;  %v1064_v52 = vsel %vm1048_vm5, %v934_v63, %v968_v27  ;;  %v953_v55 = vmax.f32 %v903_v9, 0.0  ;;  %v905_v46 = vadd.f32 %v2254_v8, %v2244_v54 }
 0x113   : > { %v1009_v3 = vpop.permute.xlu1 %1008  ;;  %v1221_v16 = vadd.f32 %v1220_v18, %v1219_v56  ;;  %v888_v17 = vsub.f32 %v2249_v59, %v2242_v31  ;;  %v1080_v26 = vsel %vm2495_vm6, %v1064_v52, 0.0  ;;  %vm1051_vm1 = vcmp.eq.s32.totalorder %v1021_v23, 1 }
 0x114   : > { %vm1047_vm0 = vcmp.eq.s32.totalorder %v1009_v3, 1  ;;  %v1006_v61 = vpop.permute.xlu0 %1005  ;;  %v955_v33 = vmax.f32 %v905_v46, 0.0  ;;  %v937_v0 = vmul.f32 %v2275_v10, %v919_v1  ;;  %v938_v35 = vmul.f32 %v2275_v10, %v920_v57 }
 0x115   : > { %vm1046_vm12 = vcmp.eq.s32.totalorder %v1006_v61, 1  ;;  %v1063_v48 = vsel %vm1047_vm0, %v933_v44, %v967_v39  ;;  %v1222_v3 = vrot.slane %v1221_v16, 2  ;;  %v921_v39 = vmax.f32 %v887_v29, 0.0 }
 0x116   : > { %v1062_v58 = vsel %vm1046_vm12, %v932_v21, %v966_v37  ;;  %v1079_v19 = vsel %vm2494_vm11, %v1063_v48, 0.0  ;;  %v936_v37 = vmul.f32 %v2275_v10, %v918_v2  ;;  %v971_v61 = vmul.f32 %v2280_v50, %v953_v55 }
 0x117   : > { %v1078_v20 = vsel %vm2493_vm14, %v1062_v58, 0.0  ;;  %v1223_v31 = vadd.f32 %v1222_v3, %v1221_v16  ;;  %v889_v13 = vsub.f32 %v2249_v59, %v2222_v22  ;;  %v907_v40 = vadd.f32 %v2254_v8, %v2222_v22 }
 0x118   : > { %v1093_v47 = vadd.f32 %v1092_v34, %v1078_v20  ;;  %vm2497_vm3 = vcmp.lt.s32.totalorder %v1810_v53, 333  ;;  %v922_v48 = vmax.f32 %v888_v17, 0.0  ;;  %v1067_v42 = vsel %vm1051_vm1, %v937_v0, %v971_v61  ;;  %v1030_v34 = vpop.permute.xlu2 %1029 }
 0x119   : > { %v1224_v45 = vrot.slane %v1223_v31, 1  ;;  %v972_v9 = vmul.f32 %v2280_v50, %v954_v51  ;;  %v956_v20 = vmax.f32 %v906_v6, 0.0  ;;  %v939_v27 = vmul.f32 %v2275_v10, %v921_v39 }
 0x11a   : > { %v1094_v24 = vadd.f32 %v1093_v47, %v1079_v19  ;;  %v973_v2 = vmul.f32 %v2280_v50, %v955_v33  ;;  %v890_v22 = vsub.f32 %v2249_v59, %v2270_v41  ;;  %v908_v53 = vadd.f32 %v2254_v8, %v2270_v41 }
 0x11b   : > { %v1018_v21 = vpop.permute.xlu1 %1017  ;;  %v1225_v47 = vadd.f32 %v1224_v45, %v1223_v31  ;;  %v1083_v57 = vsel %vm2498_vm4, %v1067_v42, 0.0  ;;  %v940_v19 = vmul.f32 %v2275_v10, %v922_v48  ;;  %v974_v18 = vmul.f32 %v2280_v50, %v956_v20 }
 0x11c   : > { %vm1050_vm7 = vcmp.eq.s32.totalorder %v1018_v21, 1  ;;  %v1015_v28 = vpop.permute.xlu0 %1014  ;;  %v1095_v54 = vadd.f32 %v1094_v24, %v1080_v26  ;;  %v891_v41 = vsub.f32 %v2249_v59, %v2268_v14  ;;  %vm1054_vm2 = vcmp.eq.s32.totalorder %v1030_v34, 1 }
 0x11d   : > { %vm1049_vm13 = vcmp.eq.s32.totalorder %v1015_v28, 1  ;;  %v1066_v12 = vsel %vm1050_vm7, %v936_v37, %v970_v25  ;;  %1226 = vst [vmem:[%s2224_s13 + $0x3] sm:$0x1] %v1225_v47  ;;  %vm2499_vm12 = vcmp.lt.s32.totalorder %v1872_v36, 333  ;;  %v924_v55 = vmax.f32 %v890_v22, 0.0 }
 0x11e   : > { %v1065_v44 = vsel %vm1049_vm13, %v935_v38, %v969_v49  ;;  %v1082_v63 = vsel %vm2497_vm3, %v1066_v12, 0.0  ;;  %v923_v38 = vmax.f32 %v889_v13, 0.0  ;;  %v957_v49 = vmax.f32 %v907_v40, 0.0 }
 0x11f   : > { %v1081_v56 = vsel %vm2496_vm9, %v1065_v44, 0.0  ;;  %v958_v29 = vmax.f32 %v908_v53, 0.0  ;;  %vm2500_vm5 = vcmp.lt.s32.totalorder %v1863_v15, 333  ;;  %v1070_v25 = vsel %vm1054_vm2, %v940_v19, %v974_v18 }
 0x120   : > { %v1096_v62 = vadd.f32 %v1095_v54, %v1081_v56  ;;  %v941_v37 = vmul.f32 %v2275_v10, %v923_v38  ;;  %v975_v16 = vmul.f32 %v2280_v50, %v957_v49  ;;  %v892_v17 = vsub.f32 %v2249_v59, %v2237_v7  ;;  %v1039_v54 = vpop.permute.xlu2 %1038 }
 0x121   : > { %v910_v36 = vadd.f32 %v2254_v8, %v2237_v7  ;;  %v925_v6 = vmax.f32 %v891_v41, 0.0  ;;  %v959_v26 = vmax.f32 %v909_v60, 0.0  ;;  %v942_v12 = vmul.f32 %v2275_v10, %v924_v55 }
 0x122   : > { %v1097_v58 = vadd.f32 %v1096_v62, %v1082_v63  ;;  %v976_v15 = vmul.f32 %v2280_v50, %v958_v29  ;;  %vm2501_vm11 = vcmp.lt.s32.totalorder %v1878_v32, 333  ;;  %v926_v56 = vmax.f32 %v892_v17, 0.0 }
 0x123   : > { %v1027_v30 = vpop.permute.xlu1 %1026  ;;  %v1086_v3 = vsel %vm2501_vm11, %v1070_v25, 0.0  ;;  %vm1057_vm6 = vcmp.eq.s32.totalorder %v1039_v54, 1  ;;  %v960_v8 = vmax.f32 %v910_v36, 0.0  ;;  %v943_v0 = vmul.f32 %v2275_v10, %v925_v6 }
 0x124   : > { %vm1053_vm10 = vcmp.eq.s32.totalorder %v1027_v30, 1  ;;  %v1024_v23 = vpop.permute.xlu0 %1023  ;;  %v1098_v52 = vadd.f32 %v1097_v58, %v1083_v57  ;;  %v977_v61 = vmul.f32 %v2280_v50, %v959_v26  ;;  %vm2502_vm13 = vcmp.lt.s32.totalorder %v1914_v4, 333 }
 0x125   : > { %vm1052_vm0 = vcmp.eq.s32.totalorder %v1024_v23, 1  ;;  %v1069_v51 = vsel %vm1053_vm10, %v939_v27, %v973_v2  ;;  %v944_v13 = vmul.f32 %v2275_v10, %v926_v56  ;;  %v978_v40 = vmul.f32 %v2280_v50, %v960_v8 }
 0x126   : > { %v1068_v24 = vsel %vm1052_vm0, %v938_v35, %v972_v9  ;;  %v1085_v21 = vsel %vm2500_vm5, %v1069_v51, 0.0  ;;  %v1073_v31 = vsel %vm1057_vm6, %v943_v0, %v977_v61  ;;  %vm2503_vm1 = vcmp.lt.s32.totalorder %v1917_v5, 333 }
 0x127   : > { %v1084_v1 = vsel %vm2499_vm12, %v1068_v24, 0.0  ;;  %v1089_v48 = vsel %vm395_vm8, %v1073_v31, 0.0 }
 0x128   : > { %v1099_v46 = vadd.f32 %v1098_v52, %v1084_v1 }
 0x12a   : > { %v1100_v28 = vadd.f32 %v1099_v46, %v1085_v21 }
 0x12b   : > { %v1036_v14 = vpop.permute.xlu1 %1035 }
 0x12c   : > { %vm1056_vm14 = vcmp.eq.s32.totalorder %v1036_v14, 1  ;;  %v1033_v44 = vpop.permute.xlu0 %1032  ;;  %v1101_v33 = vadd.f32 %v1100_v28, %v1086_v3 }
 0x12d   : > { %vm1055_vm7 = vcmp.eq.s32.totalorder %v1033_v44, 1  ;;  %v1072_v39 = vsel %vm1056_vm14, %v942_v12, %v976_v15 }
 0x12e   : > { %v1071_v59 = vsel %vm1055_vm7, %v941_v37, %v975_v16  ;;  %v1088_v32 = vsel %vm2502_vm13, %v1072_v39, 0.0 }
 0x12f   : > { %v1087_v7 = vsel %vm393_vm15, %v1071_v59, 0.0 }
 0x130   : > { %v1102_v62 = vadd.f32 %v1101_v33, %v1087_v7 }
 0x132   : > { %v1103_v35 = vadd.f32 %v1102_v62, %v1088_v32 }
 0x133   : > { %v1186_v63 = vpop.permute.xlu1 %1185 }
 0x134   : > { %v1042_v43 = vpop.permute.xlu0 %1041  ;;  %1188 = vst [vmem:[%s2224_s13 + $0x2] sm:$0x1] %v1186_v63  ;;  %v1104_v42 = vadd.f32 %v1103_v35, %v1089_v48 }
 0x135   : > { %vm1058_vm15 = vcmp.eq.s32.totalorder %v1042_v43, 1 }
 0x136   : > { %v1074_v34 = vsel %vm1058_vm15, %v944_v13, %v978_v40 }
 0x137   : > { %v1090_v4 = vsel %vm2503_vm1, %v1074_v34, 0.0 }
 0x138   : > { %v1105_v58 = vadd.f32 %v1104_v42, %v1090_v4 }
 0x13a   : > { %v1106_v45 = vrot.slane %v1105_v58, 4 }
 0x13c   : > { %v1107_v10 = vadd.f32 %v1106_v45, %v1105_v58 }
 0x13e   : > { %v1108_v50 = vrot.slane %v1107_v10, 2 }
 0x140   : > { %v1109_v11 = vadd.f32 %v1108_v50, %v1107_v10 }
 0x142   : > { %v1110_v9 = vrot.slane %v1109_v11, 1 }
 0x144   : > { %v1111_v20 = vadd.f32 %v1110_v9, %v1109_v11 }
 0x146   : > { %1112 = vst [vmem:[%s2224_s13 + $0x1] sm:$0x1] %v1111_v20 }
 0x147   : > { %1423 = shalt.err (!%p1420_p3)
}
 0x148   : > { %1344 = dma.vmem_to_hbm [thread:$0]  (%p1535_p5), %s1241_s12, 64, %s1243_s14, %s1228_s15  }
 0x149 PF: > { %p1350_p4 = scmp.ge.s32.totalorder %s1458_s24, 2  ;;  %s1254_s11 = sand.u32 1, %s1446_s21  }
 0x14a   : > { %s1255_s13 = scalar_lea.sflag [#allocation3], %s1254_s11 }
 0x14b   : > { %p1347_p7 = pnand %p1350_p4, %p1539_p6 }
 0x14d   : > { %p1348_p8 = pneg %p1347_p7 }
 0x14f   : > { %1441 = dma.done.wait (%p1348_p8), %s1255_s13, 64  }
 0x150   : > { %1443 = vsyncadd (%p1348_p8), %s1255_s13, 4294967232  ;;  %p16_p9 = scmp.ge.s32.totalorder %s1522_s27, 5   ;;  %s2504_s21 = smov %s1450_s22 }
 0x151   : > { %s2505_s22 = smov %s1454_s23  ;;  %s2506_s23 = smov %s1533_s30 }
 0x152   : > { %s2507_s24 = smov %s1522_s27  ;;  %18 = sbr.rel (!%p16_p9) target bundleno = 3 (0x3), region = 82 }
 0x157   :  { %1261 = vsyncpa [#allocation3], 1 }
 0x158   :  { %1263 = vsyncpa [#allocation3 + $0x1], 1 }

</bundles_post_ra>
